<compile_context>
chip_gen: v6e
topology: v6e:2x2x1
jax: 0.10.0
libtpu: 0.0.40
codegen_flags: <defaults>
</compile_context>

<pallas_src>
import jax
import jax.numpy as jnp
from jax.experimental import pallas as pl
from jax.experimental.pallas import tpu as pltpu

LANE = 128


def _round_up(v, m=LANE):
    return ((v + m - 1) // m) * m


def _pad2d(x, rows, cols):
    return jnp.pad(x, ((0, rows - x.shape[0]), (0, cols - x.shape[1])))


# ------------------------------ fused kernel ------------------------------- #

def _fused_forward_kernel(x_ref, w_in_ref, b_in_ref, adj_ref,
                          w_cat_ref, w0_ref, w_out_ref, b_out_ref, o_ref):
    f32 = jnp.float32
    bf16 = jnp.bfloat16

    # node_in_fc + relu  (bf16 operands, f32 accumulation)
    h = jnp.maximum(
        jnp.dot(x_ref[...], w_in_ref[...], preferred_element_type=f32)
        + b_in_ref[...], 0.0)

    num_layers = w0_ref.shape[0]
    rel_num = adj_ref.shape[0]
    dp = w0_ref.shape[2]

    # L RGCN layers, statically unrolled.
    for l in range(num_layers):
        h_b = h.astype(bf16)
        # One wide matmul over all relations: (n_p, dp) @ (dp, R*dp).
        hw = jnp.dot(h_b, w_cat_ref[l], preferred_element_type=f32)
        hw_b = hw.astype(bf16)
        # Accumulator starts with the self-loop term h @ W_0 (no zero fill),
        # then adds A_r @ (h @ W_r) per relation (128-aligned lane slices).
        acc = jnp.dot(h_b, w0_ref[l], preferred_element_type=f32)
        for r in range(rel_num):
            acc = acc + jnp.dot(adj_ref[r],
                                hw_b[:, r * dp:(r + 1) * dp],
                                preferred_element_type=f32)
        h = jnp.maximum(acc, 0.0)

    # node_out_fc + relu
    out = jnp.maximum(
        jnp.dot(h.astype(bf16), w_out_ref[...], preferred_element_type=f32)
        + b_out_ref[...], 0.0)
    o_ref[...] = out.astype(o_ref.dtype)


# ------------------------------ wrapper ------------------------------------ #

def multilayer_rgcn_forward(node_in_feat, adj, params):
    """Equivalent of multiLayerRGCN.forward(g, node_in_feat) with relu acts."""
    n, d_in = node_in_feat.shape
    d = params["W_in"].shape[1]
    d_out = params["W_out"].shape[1]
    rel_num = adj.shape[0]
    num_layers = len(params["W_0"])

    # Lane-dense padded widths (node axis padded too, so the adjacency and
    # every matmul M/K dimension is a multiple of 128).
    n_p = _round_up(n)
    dip = _round_up(d_in)
    dp = _round_up(d)
    dop = _round_up(d_out)

    bf16 = jnp.bfloat16
    f32 = jnp.float32

    x_p = _pad2d(node_in_feat, n_p, dip).astype(bf16)
    w_in_p = _pad2d(params["W_in"], dip, dp).astype(bf16)
    b_in_p = _pad2d(params["b_in"].reshape(1, -1), 1, dp).astype(f32)
    w_out_p = _pad2d(params["W_out"], dp, dop).astype(bf16)
    b_out_p = _pad2d(params["b_out"].reshape(1, -1), 1, dop).astype(f32)

    # Per-layer relation weights: pad each (d, d) -> (dp, dp) and concatenate
    # along the output axis into one wide matmul operand (dp, rel_num * dp).
    w_cat_p = jnp.stack([
        jnp.concatenate([_pad2d(params["W_rel"][l][r], dp, dp)
                         for r in range(rel_num)], axis=1)
        for l in range(num_layers)]).astype(bf16)                 # (L, dp, R*dp)
    w0_p = jnp.stack([_pad2d(w, dp, dp)
                      for w in params["W_0"]]).astype(bf16)        # (L, dp, dp)

    # Dense relational adjacency A[r, dst, src], node axes zero-padded.
    adj_p = jnp.pad(adj, ((0, 0), (0, n_p - n), (0, n_p - n))).astype(bf16)

    # Whole-array VMEM residency, single kernel invocation (no grid): no
    # pipelining means no double-buffering of the resident operands.
    vmem_spec = pl.BlockSpec(memory_space=pltpu.MemorySpace.VMEM)

    out_p = pl.pallas_call(
        _fused_forward_kernel,
        out_shape=jax.ShapeDtypeStruct((n_p, dop), f32),
        in_specs=[vmem_spec] * 8,
        out_specs=vmem_spec,
        compiler_params=pltpu.CompilerParams(
            vmem_limit_bytes=48 * 1024 * 1024),
    )(x_p, w_in_p, b_in_p, adj_p, w_cat_p, w0_p, w_out_p, b_out_p)

    # Slice off padded destination rows and padded feature lanes.
    return out_p[:n, :d_out].astype(node_in_feat.dtype)


def reference_forward(node_in_feat, adj, params):
    """Pure-jnp f32 reference for correctness checking."""
    h = jnp.maximum(node_in_feat @ params["W_in"] + params["b_in"], 0.0)
    for w_rel, w0 in zip(params["W_rel"], params["W_0"]):
        hw = jnp.einsum("nd,rde->rne", h, w_rel)
        agg = jnp.einsum("rvu,rue->ve", adj, hw)
        h = jnp.maximum(h @ w0 + agg, 0.0)
    return jnp.maximum(h @ params["W_out"] + params["b_out"], 0.0)


# ---------------------------------- main ----------------------------------- #

if __name__ == "__main__":
    # Small shapes consistent with the module.
    num_nodes = 16
    num_edges = 48
    node_in_dim = 8
    node_dim = 32
    node_out_dim = 16
    rel_num = 3
    L = 2

    key = jax.random.PRNGKey(0)
    ks = jax.random.split(key, 12)

    # Deterministic parameter init (synthetic; no checkpoint).
    params = {
        "W_in": 0.1 * jax.random.normal(ks[0], (node_in_dim, node_dim), jnp.float32),
        "b_in": 0.1 * jax.random.normal(ks[1], (node_dim,), jnp.float32),
        "W_out": 0.1 * jax.random.normal(ks[2], (node_dim, node_out_dim), jnp.float32),
        "b_out": 0.1 * jax.random.normal(ks[3], (node_out_dim,), jnp.float32),
        "W_rel": [0.1 * jax.random.normal(ks[4 + l], (rel_num, node_dim, node_dim),
                                          jnp.float32) for l in range(L)],
        "W_0": [0.1 * jax.random.normal(ks[6 + l], (node_dim, node_dim),
                                        jnp.float32) for l in range(L)],
    }

    # Deterministic synthetic graph: edge list (src, dst, edge_id, norm)
    # turned into a dense relational adjacency A[r, dst, src] += norm.
    src = jax.random.randint(ks[8], (num_edges,), 0, num_nodes)
    dst = jax.random.randint(ks[9], (num_edges,), 0, num_nodes)
    edge_id = jax.random.randint(ks[10], (num_edges,), 0, rel_num)
    norm = jax.random.uniform(ks[11], (num_edges,), jnp.float32, 0.1, 1.0)
    adj = jnp.zeros((rel_num, num_nodes, num_nodes), jnp.float32)
    adj = adj.at[edge_id, dst, src].add(norm)

    # Node input features.
    node_in_feat = jax.random.normal(jax.random.PRNGKey(1),
                                     (num_nodes, node_in_dim), jnp.float32)

    out = multilayer_rgcn_forward(node_in_feat, adj, params)
    out = jax.block_until_ready(out)

    ref = reference_forward(node_in_feat, adj, params)
    assert out.shape == (num_nodes, node_out_dim)
    # bf16 matmul operands with f32 accumulation -> loosened tolerance.
    assert jnp.allclose(out, ref, atol=2e-2, rtol=2e-2)

    print("KERNEL_OK")
</pallas_src>

<mosaic_0001>
module attributes {stable_mosaic.version = 11 : i64} {
  func.func @_fused_forward_kernel(%arg0: memref<128x128xbf16, #tpu.memory_space<vmem>>, %arg1: memref<128x128xbf16, #tpu.memory_space<vmem>>, %arg2: memref<1x128xf32, #tpu.memory_space<vmem>>, %arg3: memref<3x128x128xbf16, #tpu.memory_space<vmem>>, %arg4: memref<2x128x384xbf16, #tpu.memory_space<vmem>>, %arg5: memref<2x128x128xbf16, #tpu.memory_space<vmem>>, %arg6: memref<128x128xbf16, #tpu.memory_space<vmem>>, %arg7: memref<1x128xf32, #tpu.memory_space<vmem>>, %arg8: memref<128x128xf32, #tpu.memory_space<vmem>>) attributes {dimension_semantics = [], scalar_prefetch = 0 : i64, scratch_operands = 0 : i64, tpu.core_type = #tpu.core_type<tc>} {
    %c0 = arith.constant 0 : index
    %c0_0 = arith.constant 0 : index
    %0 = vector.load %arg0[%c0, %c0_0] : memref<128x128xbf16, #tpu.memory_space<vmem>>, vector<128x128xbf16>
    %c0_1 = arith.constant 0 : index
    %c0_2 = arith.constant 0 : index
    %1 = vector.load %arg1[%c0_1, %c0_2] : memref<128x128xbf16, #tpu.memory_space<vmem>>, vector<128x128xbf16>
    %cst = arith.constant dense<0.000000e+00> : vector<128x128xf32>
    %2 = tpu.matmul %0, %1, %cst {dimension_numbers = #tpu.dot_dimension_numbers<[1], [0], [0], [1], [0, 0, 1, 1], [], []>} : vector<128x128xbf16>, vector<128x128xbf16>, vector<128x128xf32> -> vector<128x128xf32>
    %c0_3 = arith.constant 0 : index
    %c0_4 = arith.constant 0 : index
    %3 = vector.load %arg2[%c0_3, %c0_4] : memref<1x128xf32, #tpu.memory_space<vmem>>, vector<1x128xf32>
    %4 = vector.broadcast %3 : vector<1x128xf32> to vector<128x128xf32>
    %5 = arith.addf %2, %4 : vector<128x128xf32>
    %cst_5 = arith.constant 0.000000e+00 : f32
    %6 = vector.broadcast %cst_5 : f32 to vector<128x128xf32>
    %7 = arith.maximumf %5, %6 : vector<128x128xf32>
    %8 = arith.truncf %7 : vector<128x128xf32> to vector<128x128xbf16>
    %c0_6 = arith.constant 0 : index
    %c0_7 = arith.constant 0 : index
    %c0_8 = arith.constant 0 : index
    %9 = vector.load %arg4[%c0_6, %c0_7, %c0_8] : memref<2x128x384xbf16, #tpu.memory_space<vmem>>, vector<1x128x384xbf16>
    %10 = vector.shape_cast %9 : vector<1x128x384xbf16> to vector<128x384xbf16>
    %cst_9 = arith.constant dense<0.000000e+00> : vector<128x384xf32>
    %11 = tpu.matmul %8, %10, %cst_9 {dimension_numbers = #tpu.dot_dimension_numbers<[1], [0], [0], [1], [0, 0, 1, 1], [], []>} : vector<128x128xbf16>, vector<128x384xbf16>, vector<128x384xf32> -> vector<128x384xf32>
    %12 = arith.truncf %11 : vector<128x384xf32> to vector<128x384xbf16>
    %c0_10 = arith.constant 0 : index
    %c0_11 = arith.constant 0 : index
    %c0_12 = arith.constant 0 : index
    %13 = vector.load %arg5[%c0_10, %c0_11, %c0_12] : memref<2x128x128xbf16, #tpu.memory_space<vmem>>, vector<1x128x128xbf16>
    %14 = vector.shape_cast %13 : vector<1x128x128xbf16> to vector<128x128xbf16>
    %cst_13 = arith.constant dense<0.000000e+00> : vector<128x128xf32>
    %15 = tpu.matmul %8, %14, %cst_13 {dimension_numbers = #tpu.dot_dimension_numbers<[1], [0], [0], [1], [0, 0, 1, 1], [], []>} : vector<128x128xbf16>, vector<128x128xbf16>, vector<128x128xf32> -> vector<128x128xf32>
    %c0_14 = arith.constant 0 : index
    %c0_15 = arith.constant 0 : index
    %c0_16 = arith.constant 0 : index
    %16 = vector.load %arg3[%c0_14, %c0_15, %c0_16] : memref<3x128x128xbf16, #tpu.memory_space<vmem>>, vector<1x128x128xbf16>
    %17 = vector.shape_cast %16 : vector<1x128x128xbf16> to vector<128x128xbf16>
    %18 = vector.extract_strided_slice %12 {offsets = [0, 0], sizes = [128, 128], strides = [1, 1]} : vector<128x384xbf16> to vector<128x128xbf16>
    %cst_17 = arith.constant dense<0.000000e+00> : vector<128x128xf32>
    %19 = tpu.matmul %17, %18, %cst_17 {dimension_numbers = #tpu.dot_dimension_numbers<[1], [0], [0], [1], [0, 0, 1, 1], [], []>} : vector<128x128xbf16>, vector<128x128xbf16>, vector<128x128xf32> -> vector<128x128xf32>
    %20 = arith.addf %15, %19 : vector<128x128xf32>
    %c1 = arith.constant 1 : index
    %c0_18 = arith.constant 0 : index
    %c0_19 = arith.constant 0 : index
    %21 = vector.load %arg3[%c1, %c0_18, %c0_19] : memref<3x128x128xbf16, #tpu.memory_space<vmem>>, vector<1x128x128xbf16>
    %22 = vector.shape_cast %21 : vector<1x128x128xbf16> to vector<128x128xbf16>
    %23 = vector.extract_strided_slice %12 {offsets = [0, 128], sizes = [128, 128], strides = [1, 1]} : vector<128x384xbf16> to vector<128x128xbf16>
    %cst_20 = arith.constant dense<0.000000e+00> : vector<128x128xf32>
    %24 = tpu.matmul %22, %23, %cst_20 {dimension_numbers = #tpu.dot_dimension_numbers<[1], [0], [0], [1], [0, 0, 1, 1], [], []>} : vector<128x128xbf16>, vector<128x128xbf16>, vector<128x128xf32> -> vector<128x128xf32>
    %25 = arith.addf %20, %24 : vector<128x128xf32>
    %c2 = arith.constant 2 : index
    %c0_21 = arith.constant 0 : index
    %c0_22 = arith.constant 0 : index
    %26 = vector.load %arg3[%c2, %c0_21, %c0_22] : memref<3x128x128xbf16, #tpu.memory_space<vmem>>, vector<1x128x128xbf16>
    %27 = vector.shape_cast %26 : vector<1x128x128xbf16> to vector<128x128xbf16>
    %28 = vector.extract_strided_slice %12 {offsets = [0, 256], sizes = [128, 128], strides = [1, 1]} : vector<128x384xbf16> to vector<128x128xbf16>
    %cst_23 = arith.constant dense<0.000000e+00> : vector<128x128xf32>
    %29 = tpu.matmul %27, %28, %cst_23 {dimension_numbers = #tpu.dot_dimension_numbers<[1], [0], [0], [1], [0, 0, 1, 1], [], []>} : vector<128x128xbf16>, vector<128x128xbf16>, vector<128x128xf32> -> vector<128x128xf32>
    %30 = arith.addf %25, %29 : vector<128x128xf32>
    %cst_24 = arith.constant 0.000000e+00 : f32
    %31 = vector.broadcast %cst_24 : f32 to vector<128x128xf32>
    %32 = arith.maximumf %30, %31 : vector<128x128xf32>
    %33 = arith.truncf %32 : vector<128x128xf32> to vector<128x128xbf16>
    %c1_25 = arith.constant 1 : index
    %c0_26 = arith.constant 0 : index
    %c0_27 = arith.constant 0 : index
    %34 = vector.load %arg4[%c1_25, %c0_26, %c0_27] : memref<2x128x384xbf16, #tpu.memory_space<vmem>>, vector<1x128x384xbf16>
    %35 = vector.shape_cast %34 : vector<1x128x384xbf16> to vector<128x384xbf16>
    %cst_28 = arith.constant dense<0.000000e+00> : vector<128x384xf32>
    %36 = tpu.matmul %33, %35, %cst_28 {dimension_numbers = #tpu.dot_dimension_numbers<[1], [0], [0], [1], [0, 0, 1, 1], [], []>} : vector<128x128xbf16>, vector<128x384xbf16>, vector<128x384xf32> -> vector<128x384xf32>
    %37 = arith.truncf %36 : vector<128x384xf32> to vector<128x384xbf16>
    %c1_29 = arith.constant 1 : index
    %c0_30 = arith.constant 0 : index
    %c0_31 = arith.constant 0 : index
    %38 = vector.load %arg5[%c1_29, %c0_30, %c0_31] : memref<2x128x128xbf16, #tpu.memory_space<vmem>>, vector<1x128x128xbf16>
    %39 = vector.shape_cast %38 : vector<1x128x128xbf16> to vector<128x128xbf16>
    %cst_32 = arith.constant dense<0.000000e+00> : vector<128x128xf32>
    %40 = tpu.matmul %33, %39, %cst_32 {dimension_numbers = #tpu.dot_dimension_numbers<[1], [0], [0], [1], [0, 0, 1, 1], [], []>} : vector<128x128xbf16>, vector<128x128xbf16>, vector<128x128xf32> -> vector<128x128xf32>
    %c0_33 = arith.constant 0 : index
    %c0_34 = arith.constant 0 : index
    %c0_35 = arith.constant 0 : index
    %41 = vector.load %arg3[%c0_33, %c0_34, %c0_35] : memref<3x128x128xbf16, #tpu.memory_space<vmem>>, vector<1x128x128xbf16>
    %42 = vector.shape_cast %41 : vector<1x128x128xbf16> to vector<128x128xbf16>
    %43 = vector.extract_strided_slice %37 {offsets = [0, 0], sizes = [128, 128], strides = [1, 1]} : vector<128x384xbf16> to vector<128x128xbf16>
    %cst_36 = arith.constant dense<0.000000e+00> : vector<128x128xf32>
    %44 = tpu.matmul %42, %43, %cst_36 {dimension_numbers = #tpu.dot_dimension_numbers<[1], [0], [0], [1], [0, 0, 1, 1], [], []>} : vector<128x128xbf16>, vector<128x128xbf16>, vector<128x128xf32> -> vector<128x128xf32>
    %45 = arith.addf %40, %44 : vector<128x128xf32>
    %c1_37 = arith.constant 1 : index
    %c0_38 = arith.constant 0 : index
    %c0_39 = arith.constant 0 : index
    %46 = vector.load %arg3[%c1_37, %c0_38, %c0_39] : memref<3x128x128xbf16, #tpu.memory_space<vmem>>, vector<1x128x128xbf16>
    %47 = vector.shape_cast %46 : vector<1x128x128xbf16> to vector<128x128xbf16>
    %48 = vector.extract_strided_slice %37 {offsets = [0, 128], sizes = [128, 128], strides = [1, 1]} : vector<128x384xbf16> to vector<128x128xbf16>
    %cst_40 = arith.constant dense<0.000000e+00> : vector<128x128xf32>
    %49 = tpu.matmul %47, %48, %cst_40 {dimension_numbers = #tpu.dot_dimension_numbers<[1], [0], [0], [1], [0, 0, 1, 1], [], []>} : vector<128x128xbf16>, vector<128x128xbf16>, vector<128x128xf32> -> vector<128x128xf32>
    %50 = arith.addf %45, %49 : vector<128x128xf32>
    %c2_41 = arith.constant 2 : index
    %c0_42 = arith.constant 0 : index
    %c0_43 = arith.constant 0 : index
    %51 = vector.load %arg3[%c2_41, %c0_42, %c0_43] : memref<3x128x128xbf16, #tpu.memory_space<vmem>>, vector<1x128x128xbf16>
    %52 = vector.shape_cast %51 : vector<1x128x128xbf16> to vector<128x128xbf16>
    %53 = vector.extract_strided_slice %37 {offsets = [0, 256], sizes = [128, 128], strides = [1, 1]} : vector<128x384xbf16> to vector<128x128xbf16>
    %cst_44 = arith.constant dense<0.000000e+00> : vector<128x128xf32>
    %54 = tpu.matmul %52, %53, %cst_44 {dimension_numbers = #tpu.dot_dimension_numbers<[1], [0], [0], [1], [0, 0, 1, 1], [], []>} : vector<128x128xbf16>, vector<128x128xbf16>, vector<128x128xf32> -> vector<128x128xf32>
    %55 = arith.addf %50, %54 : vector<128x128xf32>
    %cst_45 = arith.constant 0.000000e+00 : f32
    %56 = vector.broadcast %cst_45 : f32 to vector<128x128xf32>
    %57 = arith.maximumf %55, %56 : vector<128x128xf32>
    %58 = arith.truncf %57 : vector<128x128xf32> to vector<128x128xbf16>
    %c0_46 = arith.constant 0 : index
    %c0_47 = arith.constant 0 : index
    %59 = vector.load %arg6[%c0_46, %c0_47] : memref<128x128xbf16, #tpu.memory_space<vmem>>, vector<128x128xbf16>
    %cst_48 = arith.constant dense<0.000000e+00> : vector<128x128xf32>
    %60 = tpu.matmul %58, %59, %cst_48 {dimension_numbers = #tpu.dot_dimension_numbers<[1], [0], [0], [1], [0, 0, 1, 1], [], []>} : vector<128x128xbf16>, vector<128x128xbf16>, vector<128x128xf32> -> vector<128x128xf32>
    %c0_49 = arith.constant 0 : index
    %c0_50 = arith.constant 0 : index
    %61 = vector.load %arg7[%c0_49, %c0_50] : memref<1x128xf32, #tpu.memory_space<vmem>>, vector<1x128xf32>
    %62 = vector.broadcast %61 : vector<1x128xf32> to vector<128x128xf32>
    %63 = arith.addf %60, %62 : vector<128x128xf32>
    %cst_51 = arith.constant 0.000000e+00 : f32
    %64 = vector.broadcast %cst_51 : f32 to vector<128x128xf32>
    %65 = arith.maximumf %63, %64 : vector<128x128xf32>
    %c0_52 = arith.constant 0 : index
    %c0_53 = arith.constant 0 : index
    %66 = vector.load %arg8[%c0_52, %c0_53] : memref<128x128xf32, #tpu.memory_space<vmem>>, vector<128x128xf32>
    tpu.vector_store %arg8[%c0_52, %c0_53], %65 {strides = array<i32>} : memref<128x128xf32, #tpu.memory_space<vmem>>, vector<128x128xf32>,
    return
  }
}

</mosaic_0001>

<bundles_post_ra>
// kernel: tpu_custom_call.1
= control target key start
LH: loop header
LB: loop body
LE: loop exit
PB: predicated region body
PF: predicated region fallthrough
CT: control target
= control target key end

     0   :  { %13 = vsyncpa [#allocation3], 0  ;;  %s4057_s0 = inlined_call_operand.hbm [shape: bf16[128,128], index: 0, kind: input, shape index: {}]   ;;  %s4058_s1 = inlined_call_operand.hbm [shape: bf16[128,128], index: 1, kind: input, shape index: {}]   ;;  %s4059_s2 = inlined_call_operand.vmem [shape: f32[1,128], index: 2, kind: input, shape index: {}]   ;;  %s4060_s3 = inlined_call_operand.hbm [shape: bf16[3,128,128], index: 3, kind: input, shape index: {}]   ;;  %s4061_s4 = inlined_call_operand.hbm [shape: bf16[2,128,384], index: 4, kind: input, shape index: {}]   ;;  %s4062_s5 = inlined_call_operand.hbm [shape: bf16[2,128,128], index: 5, kind: input, shape index: {}]   ;;  %s4063_s6 = inlined_call_operand.hbm [shape: bf16[128,128], index: 6, kind: input, shape index: {}]   ;;  %s4064_s7 = inlined_call_operand.vmem [shape: f32[1,128], index: 7, kind: input, shape index: {}]   ;;  %s4065_s8 = inlined_call_operand.hbm [shape: f32[128,128], index: 8, kind: output, shape index: {}]  }
   0x1   :  { %14 = vsyncpa [#allocation6], 0 }
   0x2   :  { %15 = vsyncpa [#allocation9], 0 }
   0x3   :  { %16 = vsyncpa [#allocation12], 0 }
   0x4   :  { %17 = vsyncpa [#allocation4], 0  ;;  %s3571_s27 = smov [#allocation5]   ;;  %s3572_s29 = smov [#allocation8]  }
   0x5   :  { %s35_s28 = sshll.u32 %s3571_s27, 4  ;;  %s61_s30 = sshll.u32 %s3572_s29, 4  ;;  %s36_s28 = int_to_ptr.vmem [resolvable:$true] %s35_s28  ;;  %s62_s30 = int_to_ptr.vmem [resolvable:$true] %s61_s30 }
   0x6   :  { %s3429_s9 = scalar_lea.vmem %s36_s28, 1024  ;;  %p3434_p1 = scmp.lt.s32.totalorder %s36_s28, %s36_s28 }
   0x7   :  { %p3430_p0 = scmp.ne.s32.totalorder %s36_s28, %s3429_s9  ;;  %p3435_p2 = scmp.lt.s32.totalorder %s3429_s9, %s3429_s9 }
   0x9   :  { %p3436_p3 = por %p3435_p2, %p3434_p1 }
   0xb   :  { %p3437_p4 = pnand %p3436_p3, %p3430_p0 }
   0xd   :  { %3440 = shalt.err (!%p3437_p4)
}
   0xe   :  { %s3573_s10 = smov 64   ;;  %s3574_s11 = smov 4  }
   0xf   :  { %41 = dma.hbm_to_vmem [thread:$0]  %s4058_s1, 1024, %s36_s28, [#allocation6], %s3573_s10, %s3573_s10, %s3574_s11  }
  0x10   :  { %s3449_s14 = scalar_lea.vmem %s62_s30, 6144  ;;  %p3454_p6 = scmp.lt.s32.totalorder %s62_s30, %s62_s30 }
  0x11   :  { %p3450_p5 = scmp.ne.s32.totalorder %s62_s30, %s3449_s14  ;;  %p3455_p7 = scmp.lt.s32.totalorder %s3449_s14, %s3449_s14 }
  0x13   :  { %p3456_p8 = por %p3455_p7, %p3454_p6 }
  0x15   :  { %p3457_p9 = pnand %p3456_p8, %p3450_p5 }
  0x17   :  { %3460 = shalt.err (!%p3457_p9)
}
  0x18   :  { %s3575_s15 = smov 192   ;;  %s3576_s16 = smov 12  }
  0x19   :  { %67 = dma.hbm_to_vmem [thread:$0]  %s4061_s4, 6144, %s62_s30, [#allocation9], %s3575_s15, %s3575_s15, %s3576_s16  }
  0x1a   :  { %s3577_s19 = smov [#allocation2]   ;;  %s3578_s21 = smov [#allocation7]  }
  0x1b   :  { %s23_s20 = sshll.u32 %s3577_s19, 4  ;;  %s49_s22 = sshll.u32 %s3578_s21, 4  ;;  %s24_s20 = int_to_ptr.vmem [resolvable:$true] %s23_s20  ;;  %s50_s22 = int_to_ptr.vmem [resolvable:$true] %s49_s22 }
  0x1c   :  { %s3469_s1 = scalar_lea.vmem %s24_s20, 1024  ;;  %p3474_p11 = scmp.lt.s32.totalorder %s24_s20, %s24_s20 }
  0x1d   :  { %p3470_p10 = scmp.ne.s32.totalorder %s24_s20, %s3469_s1  ;;  %p3475_p12 = scmp.lt.s32.totalorder %s3469_s1, %s3469_s1 }
  0x1f   :  { %p3476_p13 = por %p3475_p12, %p3474_p11 }
  0x21   :  { %p3477_p0 = pnand %p3476_p13, %p3470_p10 }
  0x23   :  { %3480 = shalt.err (!%p3477_p0)
}
  0x24   :  { %29 = dma.hbm_to_vmem [thread:$0]  %s4057_s0, 1024, %s24_s20, [#allocation3], %s3573_s10, %s3573_s10, %s3574_s11  }
  0x25   :  { %s3489_s4 = scalar_lea.vmem %s50_s22, 3072  ;;  %p3494_p2 = scmp.lt.s32.totalorder %s50_s22, %s50_s22 }
  0x26   :  { %p3490_p1 = scmp.ne.s32.totalorder %s50_s22, %s3489_s4  ;;  %p3495_p3 = scmp.lt.s32.totalorder %s3489_s4, %s3489_s4 }
  0x28   :  { %p3496_p4 = por %p3495_p3, %p3494_p2 }
  0x2a   :  { %p3497_p5 = pnand %p3496_p4, %p3490_p1 }
  0x2c   :  { %3500 = shalt.err (!%p3497_p5)
}
  0x2d   :  { %55 = dma.hbm_to_vmem [thread:$0]  %s4060_s3, 3072, %s50_s22, [#allocation6], %s3573_s10, %s3573_s10, %s3574_s11  }
  0x2e   :  { %s3579_s27 = smov [#allocation10]   ;;  %s3580_s29 = smov [#allocation11]  }
  0x2f   :  { %s73_s28 = sshll.u32 %s3579_s27, 4  ;;  %s85_s30 = sshll.u32 %s3580_s29, 4  ;;  %s74_s28 = int_to_ptr.vmem [resolvable:$true] %s73_s28  ;;  %s86_s30 = int_to_ptr.vmem [resolvable:$true] %s85_s30 }
  0x30   :  { %s3509_s0 = scalar_lea.vmem %s74_s28, 2048  ;;  %p3514_p7 = scmp.lt.s32.totalorder %s74_s28, %s74_s28 }
  0x31   :  { %p3510_p6 = scmp.ne.s32.totalorder %s74_s28, %s3509_s0  ;;  %p3515_p8 = scmp.lt.s32.totalorder %s3509_s0, %s3509_s0 }
  0x33   :  { %p3516_p9 = por %p3515_p8, %p3514_p7 }
  0x35   :  { %p3517_p10 = pnand %p3516_p9, %p3510_p6 }
  0x37   :  { %3520 = shalt.err (!%p3517_p10)
}
  0x38   :  { %79 = dma.hbm_to_vmem [thread:$0]  %s4062_s5, 2048, %s74_s28, [#allocation9], %s3573_s10, %s3573_s10, %s3574_s11  }
  0x39   :  { %s3529_s3 = scalar_lea.vmem %s86_s30, 1024  ;;  %p3534_p12 = scmp.lt.s32.totalorder %s86_s30, %s86_s30 }
  0x3a   :  { %p3530_p11 = scmp.ne.s32.totalorder %s86_s30, %s3529_s3  ;;  %p3535_p13 = scmp.lt.s32.totalorder %s3529_s3, %s3529_s3 }
  0x3c   :  { %p3536_p0 = por %p3535_p13, %p3534_p12 }
  0x3e   :  { %p3537_p1 = pnand %p3536_p0, %p3530_p11 }
  0x40   :  { %3540 = shalt.err (!%p3537_p1)
}
  0x41   :  { %91 = dma.hbm_to_vmem [thread:$0]  %s4063_s6, 1024, %s86_s30, [#allocation12], %s3573_s10, %s3573_s10, %s3574_s11  }
  0x42   :  { %3561 = dma.done.wait [#allocation3], 1024  }
  0x43   :  { %3562 = vsyncadd [#allocation3], 4294966272 }
  0x44   :  { %3563 = dma.done.wait [#allocation6], 4096  }
  0x45   :  { %3564 = vsyncadd [#allocation6], 4294963200 }
  0x46   :  { %3565 = dma.done.wait [#allocation9], 8192  }
  0x47   :  { %3566 = vsyncadd [#allocation9], 4294959104 }
  0x48   :  { %3567 = dma.done.wait [#allocation12], 1024  }
  0x49   :  { %3568 = vsyncadd [#allocation12], 4294966272  ;;  %v3293_v0 = vld [vmem:[#allocation5 + $0x38] sm:$0xff]   ;;  %v3294_v1 = vld [vmem:[#allocation5 + $0x30] sm:$0xff]   ;;  %v4066_v40 = vmov 0  }
  0x4a   :  { %2895 = vmatprep.subr.bf16.mxu0 %v3293_v0  ;;  %v3295_v2 = vld [vmem:[#allocation5 + $0x28] sm:$0xff]   ;;  %v3296_v3 = vld [vmem:[#allocation5 + $0x20] sm:$0xff]   ;;  %v3297_v5 = vld [vmem:[#allocation5 + $0x18] sm:$0xff]   ;;  %561 = vmatprep.mubr.bf16.mxu1 %v4066_v40 }
  0x4b   :  { %2896 = vmatpush3.bf16.msra.mxu0 %v3293_v0  ;;  %v3301_v4 = vld [vmem:[#allocation2] sm:$0xff]   ;;  %v3298_v6 = vld [vmem:[#allocation5 + $0x10] sm:$0xff]   ;;  %v3309_v7 = vld [vmem:[#allocation8 + $0xac] ss:$12 sps:$4 sm:$0xff]  }
  0x4c   :  { %2897 = vmatprep.subr.bf16.mxu0 %v3294_v1  ;;  %2911 = vmatprep.mubr.bf16.mxu0 %v3301_v4  ;;  %v3311_v8 = vld [vmem:[#allocation8 + $0xa8] ss:$12 sps:$4 sm:$0xff]   ;;  %v3315_v10 = vld [vmem:[#allocation8 + $0x90] ss:$12 sps:$4 sm:$0xff]   ;;  %v3300_v13 = vld [vmem:[#allocation5] sm:$0xff]  }
  0x4d   :  { %529 = vmatprep.subr.bf16.mxu1 %v3309_v7  ;;  %v3313_v9 = vld [vmem:[#allocation8 + $0x94] ss:$12 sps:$4 sm:$0xff]   ;;  %v3299_v11 = vld [vmem:[#allocation5 + $0x8] sm:$0xff]   ;;  %v3319_v14 = vld [vmem:[#allocation8 + $0x78] ss:$12 sps:$4 sm:$0xff]  }
  0x4e   :  { %530 = vmatpush1.bf16.msra.mxu1 %v3311_v8  ;;  %v3317_v12 = vld [vmem:[#allocation8 + $0x7c] ss:$12 sps:$4 sm:$0xff]   ;;  %v3321_v15 = vld [vmem:[#allocation8 + $0x64] ss:$12 sps:$4 sm:$0xff]   ;;  %v3323_v17 = vld [vmem:[#allocation8 + $0x60] ss:$12 sps:$4 sm:$0xff]  }
  0x4f   :  { %2898 = vmatpush3.bf16.msra.mxu0 %v3294_v1  ;;  %531 = vmatprep.subr.bf16.mxu1 %v3313_v9  ;;  %v3312_v16 = vld [vmem:[#allocation8 + $0xb0] ss:$12 sps:$4 sm:$0xff]   ;;  %v3325_v18 = vld [vmem:[#allocation8 + $0x4c] ss:$12 sps:$4 sm:$0xff]   ;;  %v3327_v22 = vld [vmem:[#allocation8 + $0x48] ss:$12 sps:$4 sm:$0xff]  }
  0x50   :  { %2899 = vmatprep.subr.bf16.mxu0 %v3295_v2  ;;  %v3302_v19 = vld [vmem:[#allocation2 + $0x8] sm:$0xff]   ;;  %v3303_v20 = vld [vmem:[#allocation2 + $0x10] sm:$0xff]   ;;  %v3316_v21 = vld [vmem:[#allocation8 + $0x98] ss:$12 sps:$4 sm:$0xff]  }
  0x51   :  { %v3320_v23 = vld [vmem:[#allocation8 + $0x80] ss:$12 sps:$4 sm:$0xff]   ;;  %v3304_v24 = vld [vmem:[#allocation2 + $0x18] sm:$0xff]   ;;  %v3324_v26 = vld [vmem:[#allocation8 + $0x68] ss:$12 sps:$4 sm:$0xff]  }
  0x52   :  { %532 = vmatpush1.bf16.msra.mxu1 %v3315_v10  ;;  %v3305_v25 = vld [vmem:[#allocation2 + $0x20] sm:$0xff]   ;;  %v3328_v27 = vld [vmem:[#allocation8 + $0x50] ss:$12 sps:$4 sm:$0xff]   ;;  %v3306_v28 = vld [vmem:[#allocation2 + $0x28] sm:$0xff]  }
  0x53   :  { %2900 = vmatpush3.bf16.msra.mxu0 %v3295_v2  ;;  %533 = vmatprep.subr.bf16.mxu1 %v3317_v12  ;;  %v3307_v29 = vld [vmem:[#allocation2 + $0x30] sm:$0xff]   ;;  %v3308_v30 = vld [vmem:[#allocation2 + $0x38] sm:$0xff]   ;;  %v3336_v36 = vld [vmem:[#allocation8 + $0x20] ss:$12 sps:$4 sm:$0xff]  }
  0x54   :  { %2901 = vmatprep.subr.bf16.mxu0 %v3296_v3  ;;  %v3329_v31 = vld [vmem:[#allocation8 + $0x34] ss:$12 sps:$4 sm:$0xff]   ;;  %v3331_v32 = vld [vmem:[#allocation8 + $0x30] ss:$12 sps:$4 sm:$0xff]   ;;  %v3332_v33 = vld [vmem:[#allocation8 + $0x38] ss:$12 sps:$4 sm:$0xff]  }
  0x55   :  { %v3333_v34 = vld [vmem:[#allocation8 + $0x1c] ss:$12 sps:$4 sm:$0xff]   ;;  %v3335_v35 = vld [vmem:[#allocation8 + $0x18] ss:$12 sps:$4 sm:$0xff]   ;;  %v3339_v38 = vld [vmem:[#allocation8] ss:$12 sps:$4 sm:$0xff]  }
  0x56   :  { %534 = vmatpush1.bf16.msra.mxu1 %v3319_v14  ;;  %v3337_v37 = vld [vmem:[#allocation8 + $0x4] ss:$12 sps:$4 sm:$0xff]   ;;  %v3340_v39 = vld [vmem:[#allocation8 + $0x8] ss:$12 sps:$4 sm:$0xff]   ;;  %v3341_v41 = vld [vmem:[#allocation10 + $0x38] sm:$0xff]  }
  0x57   :  { %2902 = vmatpush3.bf16.msra.mxu0 %v3296_v3  ;;  %535 = vmatprep.subr.bf16.mxu1 %v3321_v15  ;;  %v3667_v44 = vld [vmem:[%s4059_s2] ss:$0 sm:$0xff]  ;;  %v3342_v62 = vld [vmem:[#allocation10 + $0x30] sm:$0xff]  }
  0x58   :  { %2903 = vmatprep.subr.bf16.mxu0 %v3297_v5  ;;  %v3344_v14 = vld [vmem:[#allocation10 + $0x20] sm:$0xff]  }
  0x5a   :  { %536 = vmatpush1.bf16.msra.mxu1 %v3323_v17 }
  0x5b   :  { %2904 = vmatpush3.bf16.msra.mxu0 %v3297_v5  ;;  %537 = vmatprep.subr.bf16.mxu1 %v3325_v18 }
  0x5c   :  { %2905 = vmatprep.subr.bf16.mxu0 %v3298_v6 }
  0x5e   :  { %538 = vmatpush1.bf16.msra.mxu1 %v3327_v22  ;;  %v3345_v22 = vld [vmem:[#allocation10 + $0x18] sm:$0xff]  }
  0x5f   :  { %2906 = vmatpush3.bf16.msra.mxu0 %v3298_v6  ;;  %539 = vmatprep.subr.bf16.mxu1 %v3329_v31  ;;  %v3343_v6 = vld [vmem:[#allocation10 + $0x28] sm:$0xff]  }
  0x60   :  { %2907 = vmatprep.subr.bf16.mxu0 %v3299_v11 }
  0x62   :  { %540 = vmatpush1.bf16.msra.mxu1 %v3331_v32 }
  0x63   :  { %2908 = vmatpush3.bf16.msra.mxu0 %v3299_v11  ;;  %541 = vmatprep.subr.bf16.mxu1 %v3333_v34 }
  0x64   :  { %2909 = vmatprep.subr.bf16.mxu0 %v3300_v13 }
  0x66   :  { %542 = vmatpush1.bf16.msra.mxu1 %v3335_v35 }
  0x67   :  { %2910 = vmatpush3.bf16.msra.mxu0 %v3300_v13  ;;  %543 = vmatprep.subr.bf16.mxu1 %v3337_v37  ;;  %v3347_v37 = vld [vmem:[#allocation10 + $0x8] sm:$0xff]  }
  0x68   :  { %2927 = vmatprep.subr.bf16.mxu0 %v3312_v16 }
  0x6a   :  { %2912 = vmatmul.mubr.bf16.vlgmr.msra.gmra.mxu0 %v3302_v19  ;;  %544 = vmatpush1.bf16.msra.mxu1 %v3339_v38 }
  0x6b   :  { %2915 = vmatprep.mubr.bf16.mxu0 %v3303_v20  ;;  %2928 = vmatpush3.bf16.msra.mxu0 %v3312_v16 }
  0x6c   :  { %2929 = vmatprep.subr.bf16.mxu0 %v3316_v21  ;;  %2991 = vmatprep.subr.bf16.mxu1 %v3341_v41 }
  0x6f   :  { %2930 = vmatpush3.bf16.msra.mxu0 %v3316_v21 }
  0x70   :  { %2931 = vmatprep.subr.bf16.mxu0 %v3320_v23 }
  0x72   :  { %2916 = vmatmul.mubr.bf16.gmra.mxu0 %v3304_v24 }
  0x73   :  { %2919 = vmatprep.mubr.bf16.mxu0 %v3305_v25  ;;  %2932 = vmatpush3.bf16.msra.mxu0 %v3320_v23 }
  0x74   :  { %2933 = vmatprep.subr.bf16.mxu0 %v3324_v26 }
  0x77   :  { %2934 = vmatpush3.bf16.msra.mxu0 %v3324_v26 }
  0x78   :  { %2935 = vmatprep.subr.bf16.mxu0 %v3328_v27 }
  0x7a   :  { %2920 = vmatmul.mubr.bf16.gmra.mxu0 %v3306_v28 }
  0x7b   :  { %2923 = vmatprep.mubr.bf16.mxu0 %v3307_v29  ;;  %2936 = vmatpush3.bf16.msra.mxu0 %v3328_v27 }
  0x7c   :  { %2937 = vmatprep.subr.bf16.mxu0 %v3332_v33 }
  0x7f   :  { %2938 = vmatpush3.bf16.msra.mxu0 %v3332_v33 }
  0x80   :  { %2939 = vmatprep.subr.bf16.mxu0 %v3336_v36 }
  0x82   :  { %2924 = vmatmul.mubr.bf16.gmra.mxu0 %v3308_v30  ;;  %v3346_v30 = vld [vmem:[#allocation10 + $0x10] sm:$0xff]  }
  0x83   :  { %2940 = vmatpush3.bf16.msra.mxu0 %v3336_v36 }
  0x84   :  { %2941 = vmatprep.subr.bf16.mxu0 %v3340_v39 }
  0x87   :  { %2942 = vmatpush3.bf16.msra.mxu0 %v3340_v39 }
 0x12a   :  { %v2913_v42 = vpop.f32.mrf.mxu0 }
 0x12b   :  { %v291_v48 = vadd.f32 %v2913_v42, %v3667_v44  ;;  %v3348_v42 = vld [vmem:[#allocation10] sm:$0xff]  }
 0x12c   :  { %v282_v43 = vpop.f32.mrf.mxu0 }
 0x12d   :  { %v283_v46 = vadd.f32 %v3667_v44, %v282_v43  ;;  %v347_v55 = vmax.f32 %v291_v48, 0.0  ;;  %v3712_v43 = vld [vmem:[#allocation7] sm:$0xff]  }
 0x12e   :  { %v2914_v45 = vpop.f32.mrf.mxu0 }
 0x12f   :  { %v294_v47 = vadd.f32 %v2914_v45, %v3667_v44  ;;  %v345_v53 = vmax.f32 %v283_v46, 0.0 }
 0x130   :  { %v285_v49 = vpop.f32.mrf.mxu0 }
 0x131   :  { %v286_v50 = vadd.f32 %v3667_v44, %v285_v49  ;;  %v348_v51 = vmax.f32 %v294_v47, 0.0 }
 0x132   :  { %v2917_v52 = vpop.f32.mrf.mxu0 }
 0x133   :  { %v346_v54 = vmax.f32 %v286_v50, 0.0  ;;  %v307_v56 = vadd.f32 %v2917_v52, %v3667_v44  ;;  %v3677_v60 = vpack.c.bf16 %v348_v51, %v347_v55 }
 0x134   :  { %v298_v57 = vpop.f32.mrf.mxu0 }
 0x135   :  { %v299_v58 = vadd.f32 %v3667_v44, %v298_v57  ;;  %v3675_v59 = vpack.c.bf16 %v346_v54, %v345_v53  ;;  %v351_v0 = vmax.f32 %v307_v56, 0.0 }
 0x136   :  { %v2918_v61 = vpop.f32.mrf.mxu0 }
 0x137   :  { %v310_v63 = vadd.f32 %v2918_v61, %v3667_v44  ;;  %562 = vmatmul.mubr.bf16.vlgmr.msra.gmra.mxu1 %v3675_v59  ;;  %2943 = vmatprep.mubr.bf16.mxu0 %v3675_v59  ;;  %v349_v2 = vmax.f32 %v299_v58, 0.0 }
 0x138   :  { %v301_v1 = vpop.f32.mrf.mxu0  ;;  %2944 = vmatmul.mubr.bf16.vlgmr.msra.gmra.mxu0 %v3677_v60  ;;  %571 = vmatprep.mubr.bf16.mxu1 %v4066_v40 }
 0x139   :  { %v352_v3 = vmax.f32 %v310_v63, 0.0  ;;  %v302_v4 = vadd.f32 %v3667_v44, %v301_v1  ;;  %2992 = vmatpush3.bf16.msra.mxu1 %v3341_v41 }
 0x13a   :  { %v2921_v5 = vpop.f32.mrf.mxu0  ;;  %2993 = vmatprep.subr.bf16.mxu1 %v3342_v62 }
 0x13b   :  { %v350_v7 = vmax.f32 %v302_v4, 0.0  ;;  %v3685_v8 = vpack.c.bf16 %v352_v3, %v351_v0  ;;  %v323_v9 = vadd.f32 %v2921_v5, %v3667_v44 }
 0x13c   :  { %v314_v10 = vpop.f32.mrf.mxu0 }
 0x13d   :  { %v315_v11 = vadd.f32 %v3667_v44, %v314_v10  ;;  %v3689_v12 = vpack.c.bf16 %v350_v7, %v349_v2  ;;  %2994 = vmatpush3.bf16.msra.mxu1 %v3342_v62  ;;  %v355_v16 = vmax.f32 %v323_v9, 0.0 }
 0x13e   :  { %v2922_v13 = vpop.f32.mrf.mxu0  ;;  %2995 = vmatprep.subr.bf16.mxu1 %v3343_v6 }
 0x13f   :  { %v326_v15 = vadd.f32 %v2922_v13, %v3667_v44  ;;  %572 = vmatmul.mubr.bf16.gmra.mxu1 %v3677_v60  ;;  %2947 = vmatprep.mubr.bf16.mxu0 %v3689_v12  ;;  %v353_v18 = vmax.f32 %v315_v11, 0.0 }
 0x140   :  { %v317_v17 = vpop.f32.mrf.mxu0  ;;  %2948 = vmatmul.mubr.bf16.gmra.mxu0 %v3685_v8  ;;  %581 = vmatprep.mubr.bf16.mxu1 %v4066_v40 }
 0x141   :  { %v356_v19 = vmax.f32 %v326_v15, 0.0  ;;  %v318_v20 = vadd.f32 %v3667_v44, %v317_v17  ;;  %2996 = vmatpush3.bf16.msra.mxu1 %v3343_v6 }
 0x142   :  { %v2925_v21 = vpop.f32.mrf.mxu0  ;;  %2997 = vmatprep.subr.bf16.mxu1 %v3344_v14 }
 0x143   :  { %v354_v23 = vmax.f32 %v318_v20, 0.0  ;;  %v366_v24 = vpack.c.bf16 %v356_v19, %v355_v16  ;;  %v339_v25 = vadd.f32 %v2925_v21, %v3667_v44 }
 0x144   :  { %v330_v26 = vpop.f32.mrf.mxu0 }
 0x145   :  { %v331_v27 = vadd.f32 %v3667_v44, %v330_v26  ;;  %v365_v28 = vpack.c.bf16 %v354_v23, %v353_v18  ;;  %2998 = vmatpush3.bf16.msra.mxu1 %v3344_v14  ;;  %v359_v32 = vmax.f32 %v339_v25, 0.0 }
 0x146   :  { %v2926_v29 = vpop.f32.mrf.mxu0  ;;  %2999 = vmatprep.subr.bf16.mxu1 %v3345_v22 }
 0x147   :  { %v342_v31 = vadd.f32 %v2926_v29, %v3667_v44  ;;  %582 = vmatmul.mubr.bf16.gmra.mxu1 %v3689_v12  ;;  %2951 = vmatprep.mubr.bf16.mxu0 %v365_v28  ;;  %v357_v34 = vmax.f32 %v331_v27, 0.0 }
 0x148   :  { %v333_v33 = vpop.f32.mrf.mxu0  ;;  %2952 = vmatmul.mubr.bf16.gmra.mxu0 %v366_v24  ;;  %591 = vmatprep.mubr.bf16.mxu1 %v4066_v40 }
 0x149   :  { %v360_v35 = vmax.f32 %v342_v31, 0.0  ;;  %v334_v36 = vadd.f32 %v3667_v44, %v333_v33  ;;  %3000 = vmatpush3.bf16.msra.mxu1 %v3345_v22  ;;  %v3715_v44 = vld [vmem:[#allocation7 + $0x80] sm:$0xff]  }
 0x14a   :  { %3001 = vmatprep.subr.bf16.mxu1 %v3346_v30 }
 0x14b   :  { %v358_v38 = vmax.f32 %v334_v36, 0.0  ;;  %v368_v39 = vpack.c.bf16 %v360_v35, %v359_v32 }
 0x14d   :  { %v367_v41 = vpack.c.bf16 %v358_v38, %v357_v34  ;;  %3002 = vmatpush3.bf16.msra.mxu1 %v3346_v30 }
 0x14e   :  { %3003 = vmatprep.subr.bf16.mxu1 %v3347_v37 }
 0x14f   :  { %592 = vmatmul.mubr.bf16.gmra.mxu1 %v3685_v8  ;;  %2955 = vmatprep.mubr.bf16.mxu0 %v367_v41 }
 0x150   :  { %2956 = vmatmul.mubr.bf16.gmra.mxu0 %v368_v39  ;;  %601 = vmatprep.mubr.bf16.mxu1 %v4066_v40 }
 0x151   :  { %3004 = vmatpush3.bf16.msra.mxu1 %v3347_v37  ;;  %2975 = vmatprep.mubr.bf16.mxu0 %v3712_v43 }
 0x152   :  { %3005 = vmatprep.subr.bf16.mxu1 %v3348_v42 }
 0x155   :  { %3006 = vmatpush3.bf16.msra.mxu1 %v3348_v42  ;;  %v3757_v42 = vld [vmem:[#allocation7 + $0x90] sm:$0xff]  }
 0x156   :  { %4091 = vst [vmem:[#allocation20_spill] sm:$0xff] %v3757_v42 }
 0x157   :  { %602 = vmatmul.mubr.bf16.gmra.mxu1 %v365_v28 }
 0x158   :  { %611 = vmatprep.mubr.bf16.mxu1 %v4066_v40 }
 0x15f   :  { %612 = vmatmul.mubr.bf16.gmra.mxu1 %v366_v24 }
 0x160   :  { %621 = vmatprep.mubr.bf16.mxu1 %v4066_v40 }
 0x167   :  { %622 = vmatmul.mubr.bf16.gmra.mxu1 %v367_v41 }
 0x168   :  { %631 = vmatprep.mubr.bf16.mxu1 %v4066_v40 }
 0x16f   :  { %632 = vmatmul.mubr.bf16.gmra.mxu1 %v368_v39 }
 0x170   :  { %3007 = vmatprep.mubr.bf16.mxu1 %v3675_v59 }
 0x177   :  { %3008 = vmatmul.mubr.bf16.vlgmr.msra.gmra.mxu1 %v3677_v60 }
 0x178   :  { %3011 = vmatprep.mubr.bf16.mxu1 %v3689_v12 }
 0x17f   :  { %3012 = vmatmul.mubr.bf16.gmra.mxu1 %v3685_v8 }
 0x180   :  { %3015 = vmatprep.mubr.bf16.mxu1 %v365_v28 }
 0x187   :  { %3016 = vmatmul.mubr.bf16.gmra.mxu1 %v366_v24 }
 0x188   :  { %3019 = vmatprep.mubr.bf16.mxu1 %v367_v41 }
 0x18f   :  { %3020 = vmatmul.mubr.bf16.gmra.mxu1 %v368_v39  ;;  %v3755_v39 = vld [vmem:[#allocation7 + $0x88] sm:$0xff]  }
 0x190   :  { %3071 = vmatprep.mubr.bf16.mxu1 %v3715_v44  ;;  %4090 = vst [vmem:[#allocation19_spill] sm:$0xff] %v3755_v39 }
 0x1f7   :  { %v563_v45 = vpop.f32.mrf.mxu1 }
 0x1f8   :  { %v2945_v46 = vpop.f32.mrf.mxu0 }
 0x1f9   :  { %v3718_v47 = vpop.f32.mrf.mxu1 }
 0x1fa   :  { %v3720_v48 = vpop.f32.mrf.mxu0 }
 0x1fb   :  { %v567_v49 = vpop.f32.mrf.mxu1 }
 0x1fc   :  { %v3722_v50 = vpack.c.bf16 %v567_v49, %v563_v45  ;;  %v2946_v51 = vpop.f32.mrf.mxu0  ;;  %v3763_v49 = vld [vmem:[#allocation7 + $0xa0] sm:$0xff]  }
 0x1fd   :  { %v3724_v52 = vpop.f32.mrf.mxu1  ;;  %v744_v32 = vpack.c.bf16 %v2946_v51, %v2945_v46  ;;  %4093 = vst [vmem:[#allocation22_spill] sm:$0xff] %v3763_v49 }
 0x1fe   :  { %v679_v53 = vpop.f32.mrf.mxu0 }
 0x1ff   :  { %v573_v54 = vpop.f32.mrf.mxu1  ;;  %v741_v35 = vpack.c.bf16 %v679_v53, %v3720_v48  ;;  %v3761_v48 = vld [vmem:[#allocation7 + $0x98] sm:$0xff]  }
 0x200   :  { %v2949_v55 = vpop.f32.mrf.mxu0  ;;  %4092 = vst [vmem:[#allocation21_spill] sm:$0xff] %v3761_v48 }
 0x201   :  { %v3726_v56 = vpop.f32.mrf.mxu1 }
 0x202   :  { %v692_v57 = vpop.f32.mrf.mxu0 }
 0x203   :  { %v577_v58 = vpop.f32.mrf.mxu1 }
 0x204   :  { %v3728_v59 = vpack.c.bf16 %v577_v58, %v573_v54  ;;  %v2950_v60 = vpop.f32.mrf.mxu0  ;;  %v3769_v54 = vld [vmem:[#allocation7 + $0xa8] sm:$0xff]   ;;  %v3777_v58 = vld [vmem:[#allocation7 + $0xb8] sm:$0xff]  }
 0x205   :  { %v3730_v61 = vpop.f32.mrf.mxu1  ;;  %v750_v26 = vpack.c.bf16 %v2950_v60, %v2949_v55  ;;  %4094 = vst [vmem:[#allocation23_spill] sm:$0xff] %v3769_v54  ;;  %v3771_v55 = vld [vmem:[#allocation7 + $0xb0] sm:$0xff]   ;;  %4096 = vst [vmem:[#allocation25_spill] sm:$0xff] %v3777_v58 }
 0x206   :  { %v695_v62 = vpop.f32.mrf.mxu0  ;;  %4095 = vst [vmem:[#allocation24_spill] sm:$0xff] %v3771_v55 }
 0x207   :  { %v3732_v63 = vpop.f32.mrf.mxu1  ;;  %v747_v29 = vpack.c.bf16 %v695_v62, %v692_v57 }
 0x208   :  { %v2953_v0 = vpop.f32.mrf.mxu0 }
 0x209   :  { %v3734_v1 = vpop.f32.mrf.mxu1 }
 0x20a   :  { %v708_v2 = vpop.f32.mrf.mxu0 }
 0x20b   :  { %v3736_v3 = vpop.f32.mrf.mxu1 }
 0x20c   :  { %v2954_v4 = vpop.f32.mrf.mxu0  ;;  %v745_v57 = vpack.c.bf16 %v3736_v3, %v3732_v63  ;;  %v3783_v63 = vld [vmem:[#allocation7 + $0x8] sm:$0xff]   ;;  %v3792_v3 = vld [vmem:[#allocation7 + $0x18] sm:$0xff]  }
 0x20d   :  { %v3738_v5 = vpop.f32.mrf.mxu1  ;;  %v756_v19 = vpack.c.bf16 %v2954_v4, %v2953_v0  ;;  %4097 = vst [vmem:[#allocation26_spill] sm:$0xff] %v3783_v63  ;;  %v3786_v0 = vld [vmem:[#allocation7 + $0x10] sm:$0xff]   ;;  %4099 = vst [vmem:[#allocation28_spill] sm:$0xff] %v3792_v3  ;;  %v3794_v4 = vld [vmem:[#allocation7 + $0x20] sm:$0xff]  }
 0x20e   :  { %v711_v6 = vpop.f32.mrf.mxu0  ;;  %4098 = vst [vmem:[#allocation27_spill] sm:$0xff] %v3786_v0  ;;  %4100 = vst [vmem:[#allocation29_spill] sm:$0xff] %v3794_v4 }
 0x20f   :  { %v3740_v7 = vpop.f32.mrf.mxu1  ;;  %v753_v23 = vpack.c.bf16 %v711_v6, %v708_v2  ;;  %v3801_v6 = vld [vmem:[#allocation7 + $0x28] sm:$0xff]  }
 0x210   :  { %v2957_v8 = vpop.f32.mrf.mxu0  ;;  %4101 = vst [vmem:[#allocation30_spill] sm:$0xff] %v3801_v6 }
 0x211   :  { %v3742_v9 = vpop.f32.mrf.mxu1 }
 0x212   :  { %v724_v10 = vpop.f32.mrf.mxu0 }
 0x213   :  { %v3744_v11 = vpop.f32.mrf.mxu1 }
 0x214   :  { %v2958_v12 = vpop.f32.mrf.mxu0  ;;  %v748_v53 = vpack.c.bf16 %v3744_v11, %v3740_v7  ;;  %v3804_v7 = vld [vmem:[#allocation7 + $0x30] sm:$0xff]   ;;  %v3814_v11 = vld [vmem:[#allocation7 + $0x40] sm:$0xff]  }
 0x215   :  { %v762_v13 = vpack.c.bf16 %v2958_v12, %v2957_v8  ;;  %v3746_v14 = vpop.f32.mrf.mxu1  ;;  %4102 = vst [vmem:[#allocation31_spill] sm:$0xff] %v3804_v7  ;;  %v746_v8 = vpack.c.bf16 %v3738_v5, %v3734_v1  ;;  %4104 = vst [vmem:[#allocation33_spill] sm:$0xff] %v3814_v11  ;;  %v740_v12 = vpack.c.bf16 %v3724_v52, %v3718_v47  ;;  %v3820_v1 = vld [vmem:[#allocation7 + $0x48] sm:$0xff]   ;;  %v3822_v5 = vld [vmem:[#allocation7 + $0x50] sm:$0xff]  }
 0x216   :  { %v727_v15 = vpop.f32.mrf.mxu0  ;;  %4105 = vst [vmem:[#allocation34_spill] sm:$0xff] %v3820_v1  ;;  %4106 = vst [vmem:[#allocation35_spill] sm:$0xff] %v3822_v5  ;;  %v3832_v47 = vld [vmem:[#allocation7 + $0x68] sm:$0xff]   ;;  %v3834_v52 = vld [vmem:[#allocation7 + $0x70] sm:$0xff]  }
 0x217   :  { %v603_v16 = vpop.f32.mrf.mxu1  ;;  %3055 = vmatprep.subr.bf16.mxu1 %v762_v13  ;;  %v759_v17 = vpack.c.bf16 %v727_v15, %v724_v10  ;;  %v743_v10 = vpack.c.bf16 %v3730_v61, %v3726_v56  ;;  %v3826_v56 = vld [vmem:[#allocation7 + $0x58] sm:$0xff]   ;;  %v3828_v61 = vld [vmem:[#allocation7 + $0x60] sm:$0xff]   ;;  %4109 = vst [vmem:[#allocation38_spill] sm:$0xff] %v3832_v47  ;;  %4110 = vst [vmem:[#allocation39_spill] sm:$0xff] %v3834_v52 }
 0x218   :  { %3056 = vmatpush3.bf16.msra.mxu1 %v762_v13  ;;  %4107 = vst [vmem:[#allocation36_spill] sm:$0xff] %v3826_v56  ;;  %4108 = vst [vmem:[#allocation37_spill] sm:$0xff] %v3828_v61  ;;  %v3838_v13 = vld [vmem:[#allocation7 + $0x78] sm:$0xff]   ;;  %v3373_v15 = vld [vmem:[#allocation8 + $0x168] ss:$12 sps:$4 sm:$0xff]  }
 0x219   :  { %v605_v18 = vpop.f32.mrf.mxu1  ;;  %3057 = vmatprep.subr.bf16.mxu1 %v759_v17  ;;  %4111 = vst [vmem:[#allocation40_spill] sm:$0xff] %v3838_v13 }
 0x21b   :  { %v607_v20 = vpop.f32.mrf.mxu1 }
 0x21c   :  { %3058 = vmatpush3.bf16.msra.mxu1 %v759_v17  ;;  %v751_v51 = vpack.c.bf16 %v607_v20, %v603_v16  ;;  %v3376_v16 = vld [vmem:[#allocation8 + $0x170] ss:$12 sps:$4 sm:$0xff]   ;;  %v3379_v17 = vld [vmem:[#allocation8 + $0x154] ss:$12 sps:$4 sm:$0xff]  }
 0x21d   :  { %v609_v21 = vpop.f32.mrf.mxu1  ;;  %3059 = vmatprep.subr.bf16.mxu1 %v756_v19  ;;  %v3383_v20 = vld [vmem:[#allocation8 + $0x13c] ss:$12 sps:$4 sm:$0xff]  }
 0x21e   :  { %v3748_v22 = vpack.c.bf16 %v609_v21, %v605_v18  ;;  %v3377_v18 = vld [vmem:[#allocation8 + $0x150] ss:$12 sps:$4 sm:$0xff]   ;;  %v3381_v21 = vld [vmem:[#allocation8 + $0x138] ss:$12 sps:$4 sm:$0xff]  }
 0x21f   :  { %v613_v24 = vpop.f32.mrf.mxu1 }
 0x220   :  { %3060 = vmatpush3.bf16.msra.mxu1 %v756_v19  ;;  %v3380_v19 = vld [vmem:[#allocation8 + $0x158] ss:$12 sps:$4 sm:$0xff]  }
 0x221   :  { %v3750_v25 = vpop.f32.mrf.mxu1  ;;  %3061 = vmatprep.subr.bf16.mxu1 %v753_v23 }
 0x223   :  { %v617_v27 = vpop.f32.mrf.mxu1 }
 0x224   :  { %3062 = vmatpush3.bf16.msra.mxu1 %v753_v23  ;;  %v754_v46 = vpack.c.bf16 %v617_v27, %v613_v24  ;;  %v3387_v23 = vld [vmem:[#allocation8 + $0x124] ss:$12 sps:$4 sm:$0xff]   ;;  %v3385_v24 = vld [vmem:[#allocation8 + $0x120] ss:$12 sps:$4 sm:$0xff]   ;;  %v3389_v27 = vld [vmem:[#allocation8 + $0x108] ss:$12 sps:$4 sm:$0xff]  }
 0x225   :  { %v3752_v28 = vpop.f32.mrf.mxu1  ;;  %3063 = vmatprep.subr.bf16.mxu1 %v750_v26 }
 0x227   :  { %v623_v30 = vpop.f32.mrf.mxu1 }
 0x228   :  { %3064 = vmatpush3.bf16.msra.mxu1 %v750_v26  ;;  %v3391_v26 = vld [vmem:[#allocation8 + $0x10c] ss:$12 sps:$4 sm:$0xff]  }
 0x229   :  { %v625_v31 = vpop.f32.mrf.mxu1  ;;  %3065 = vmatprep.subr.bf16.mxu1 %v747_v29 }
 0x22b   :  { %v627_v33 = vpop.f32.mrf.mxu1 }
 0x22c   :  { %3066 = vmatpush3.bf16.msra.mxu1 %v747_v29  ;;  %v757_v45 = vpack.c.bf16 %v627_v33, %v623_v30  ;;  %v3395_v29 = vld [vmem:[#allocation8 + $0xf4] ss:$12 sps:$4 sm:$0xff]   ;;  %v3393_v30 = vld [vmem:[#allocation8 + $0xf0] ss:$12 sps:$4 sm:$0xff]   ;;  %v3397_v33 = vld [vmem:[#allocation8 + $0xd8] ss:$12 sps:$4 sm:$0xff]  }
 0x22d   :  { %v629_v34 = vpop.f32.mrf.mxu1  ;;  %3067 = vmatprep.subr.bf16.mxu1 %v744_v32 }
 0x22e   :  { %v758_v2 = vpack.c.bf16 %v629_v34, %v625_v31  ;;  %v3396_v31 = vld [vmem:[#allocation8 + $0xf8] ss:$12 sps:$4 sm:$0xff]   ;;  %v3400_v34 = vld [vmem:[#allocation8 + $0xe0] ss:$12 sps:$4 sm:$0xff]  }
 0x22f   :  { %v633_v36 = vpop.f32.mrf.mxu1 }
 0x230   :  { %3068 = vmatpush3.bf16.msra.mxu1 %v744_v32  ;;  %v3399_v32 = vld [vmem:[#allocation8 + $0xdc] ss:$12 sps:$4 sm:$0xff]  }
 0x231   :  { %v635_v37 = vpop.f32.mrf.mxu1  ;;  %3069 = vmatprep.subr.bf16.mxu1 %v741_v35 }
 0x233   :  { %v637_v38 = vpop.f32.mrf.mxu1 }
 0x234   :  { %v760_v41 = vpack.c.bf16 %v637_v38, %v633_v36  ;;  %3070 = vmatpush3.bf16.msra.mxu1 %v741_v35  ;;  %v3403_v35 = vld [vmem:[#allocation8 + $0xc4] ss:$12 sps:$4 sm:$0xff]   ;;  %v3401_v36 = vld [vmem:[#allocation8 + $0xc0] ss:$12 sps:$4 sm:$0xff]  }
 0x235   :  { %v639_v60 = vpop.f32.mrf.mxu1  ;;  %3087 = vmatprep.subr.bf16.mxu1 %v3376_v16 }
 0x236   :  { %2959 = vmatprep.subr.bf16.mxu0 %v760_v41  ;;  %v761_v62 = vpack.c.bf16 %v639_v60, %v635_v37  ;;  %v3404_v37 = vld [vmem:[#allocation8 + $0xc8] ss:$12 sps:$4 sm:$0xff]  }
 0x237   :  { %2960 = vmatpush3.bf16.msra.mxu0 %v760_v41  ;;  %3072 = vmatmul.mubr.bf16.vlgmr.msra.gmra.mxu1 %v3755_v39  ;;  %v3009_v38 = vpop.f32.mrf.mxu1 }
 0x238   :  { %2961 = vmatprep.subr.bf16.mxu0 %v757_v45  ;;  %3075 = vmatprep.mubr.bf16.mxu1 %v3757_v42 }
 0x239   :  { %3088 = vmatpush3.bf16.msra.mxu1 %v3376_v16  ;;  %v1022_v41 = vpop.f32.mrf.mxu1 }
 0x23a   :  { %3089 = vmatprep.subr.bf16.mxu1 %v3380_v19 }
 0x23b   :  { %2962 = vmatpush3.bf16.msra.mxu0 %v757_v45  ;;  %v3842_v45 = vld [vmem:[#allocation10 + $0x78] sm:$0xff]  }
 0x23c   :  { %2963 = vmatprep.subr.bf16.mxu0 %v754_v46 }
 0x23d   :  { %3090 = vmatpush3.bf16.msra.mxu1 %v3380_v19 }
 0x23f   :  { %2964 = vmatpush3.bf16.msra.mxu0 %v754_v46  ;;  %3076 = vmatmul.mubr.bf16.gmra.mxu1 %v3761_v48  ;;  %v3010_v46 = vpop.f32.mrf.mxu1 }
 0x240   :  { %2965 = vmatprep.subr.bf16.mxu0 %v751_v51  ;;  %3079 = vmatprep.mubr.bf16.mxu1 %v3763_v49 }
 0x243   :  { %2966 = vmatpush3.bf16.msra.mxu0 %v751_v51  ;;  %v1025_v51 = vpop.f32.mrf.mxu1 }
 0x244   :  { %2967 = vmatprep.subr.bf16.mxu0 %v748_v53 }
 0x247   :  { %2968 = vmatpush3.bf16.msra.mxu0 %v748_v53  ;;  %3080 = vmatmul.mubr.bf16.gmra.mxu1 %v3769_v54  ;;  %v3013_v53 = vpop.f32.mrf.mxu1 }
 0x248   :  { %2969 = vmatprep.subr.bf16.mxu0 %v745_v57  ;;  %3083 = vmatprep.mubr.bf16.mxu1 %v3771_v55 }
 0x24b   :  { %2970 = vmatpush3.bf16.msra.mxu0 %v745_v57  ;;  %v1038_v57 = vpop.f32.mrf.mxu1 }
 0x24c   :  { %2971 = vmatprep.subr.bf16.mxu0 %v3728_v59 }
 0x24d   :  { %v3014_v60 = vpop.f32.mrf.mxu1 }
 0x24f   :  { %2972 = vmatpush3.bf16.msra.mxu0 %v3728_v59  ;;  %3084 = vmatmul.mubr.bf16.gmra.mxu1 %v3777_v58  ;;  %v755_v59 = vpack.c.bf16 %v3752_v28, %v3750_v25  ;;  %v3388_v25 = vld [vmem:[#allocation8 + $0x128] ss:$12 sps:$4 sm:$0xff]   ;;  %v3392_v28 = vld [vmem:[#allocation8 + $0x110] ss:$12 sps:$4 sm:$0xff]  }
 0x250   :  { %2973 = vmatprep.subr.bf16.mxu0 %v3722_v50 }
 0x253   :  { %2974 = vmatpush3.bf16.msra.mxu0 %v3722_v50  ;;  %v749_v50 = vpack.c.bf16 %v3746_v14, %v3742_v9  ;;  %v3812_v9 = vld [vmem:[#allocation7 + $0x38] sm:$0xff]  }
 0x254   :  { %3023 = vmatprep.subr.bf16.mxu0 %v761_v62  ;;  %4103 = vst [vmem:[#allocation32_spill] sm:$0xff] %v3812_v9  ;;  %v3375_v14 = vld [vmem:[#allocation8 + $0x16c] ss:$12 sps:$4 sm:$0xff]  }
 0x256   :  { %2976 = vmatmul.mubr.bf16.vlgmr.msra.gmra.mxu0 %v3783_v63 }
 0x257   :  { %3024 = vmatpush3.bf16.msra.mxu0 %v761_v62  ;;  %2979 = vmatprep.mubr.bf16.mxu0 %v3786_v0  ;;  %v3845_v62 = vpop.f32.mrf.mxu1 }
 0x258   :  { %3025 = vmatprep.subr.bf16.mxu0 %v758_v2 }
 0x25b   :  { %3026 = vmatpush3.bf16.msra.mxu0 %v758_v2  ;;  %v3847_v2 = vpop.f32.mrf.mxu1 }
 0x25c   :  { %3027 = vmatprep.subr.bf16.mxu0 %v755_v59 }
 0x25e   :  { %2980 = vmatmul.mubr.bf16.gmra.mxu0 %v3792_v3 }
 0x25f   :  { %3028 = vmatpush3.bf16.msra.mxu0 %v755_v59  ;;  %2983 = vmatprep.mubr.bf16.mxu0 %v3794_v4  ;;  %v3849_v59 = vpop.f32.mrf.mxu1 }
 0x260   :  { %3029 = vmatprep.subr.bf16.mxu0 %v3748_v22 }
 0x263   :  { %3030 = vmatpush3.bf16.msra.mxu0 %v3748_v22  ;;  %v3384_v22 = vld [vmem:[#allocation8 + $0x140] ss:$12 sps:$4 sm:$0xff]  }
 0x264   :  { %3031 = vmatprep.subr.bf16.mxu0 %v749_v50  ;;  %3091 = vmatprep.subr.bf16.mxu1 %v3384_v22 }
 0x265   :  { %3092 = vmatpush3.bf16.msra.mxu1 %v3384_v22 }
 0x266   :  { %2984 = vmatmul.mubr.bf16.gmra.mxu0 %v3801_v6  ;;  %3093 = vmatprep.subr.bf16.mxu1 %v3388_v25 }
 0x267   :  { %3032 = vmatpush3.bf16.msra.mxu0 %v749_v50  ;;  %2987 = vmatprep.mubr.bf16.mxu0 %v3804_v7  ;;  %v3851_v50 = vpop.f32.mrf.mxu1 }
 0x268   :  { %3033 = vmatprep.subr.bf16.mxu0 %v746_v8 }
 0x269   :  { %3094 = vmatpush3.bf16.msra.mxu1 %v3388_v25 }
 0x26a   :  { %3095 = vmatprep.subr.bf16.mxu1 %v3392_v28 }
 0x26b   :  { %3034 = vmatpush3.bf16.msra.mxu0 %v746_v8  ;;  %v3853_v8 = vpop.f32.mrf.mxu1 }
 0x26c   :  { %3035 = vmatprep.subr.bf16.mxu0 %v743_v10 }
 0x26d   :  { %3096 = vmatpush3.bf16.msra.mxu1 %v3392_v28 }
 0x26e   :  { %2988 = vmatmul.mubr.bf16.gmra.mxu0 %v3812_v9  ;;  %3097 = vmatprep.subr.bf16.mxu1 %v3396_v31 }
 0x26f   :  { %3036 = vmatpush3.bf16.msra.mxu0 %v743_v10  ;;  %3039 = vmatprep.mubr.bf16.mxu0 %v3814_v11  ;;  %v3855_v10 = vpop.f32.mrf.mxu1 }
 0x270   :  { %3037 = vmatprep.subr.bf16.mxu0 %v740_v12 }
 0x271   :  { %3098 = vmatpush3.bf16.msra.mxu1 %v3396_v31 }
 0x272   :  { %3099 = vmatprep.subr.bf16.mxu1 %v3400_v34 }
 0x273   :  { %3038 = vmatpush3.bf16.msra.mxu0 %v740_v12  ;;  %v3857_v12 = vpop.f32.mrf.mxu1 }
 0x274   :  { %1626 = vmatprep.subr.bf16.mxu0 %v3375_v14 }
 0x275   :  { %3100 = vmatpush3.bf16.msra.mxu1 %v3400_v34  ;;  %v3859_v14 = vpop.f32.mrf.mxu1 }
 0x276   :  { %3040 = vmatmul.mubr.bf16.vlgmr.msra.gmra.mxu0 %v3820_v1  ;;  %3101 = vmatprep.subr.bf16.mxu1 %v3404_v37 }
 0x277   :  { %3043 = vmatprep.mubr.bf16.mxu0 %v3822_v5  ;;  %1627 = vmatpush1.bf16.msra.mxu0 %v3373_v15  ;;  %v3861_v16 = vpop.f32.mrf.mxu1 }
 0x278   :  { %1628 = vmatprep.subr.bf16.mxu0 %v3379_v17 }
 0x279   :  { %3102 = vmatpush3.bf16.msra.mxu1 %v3404_v37 }
 0x27b   :  { %1629 = vmatpush1.bf16.msra.mxu0 %v3377_v18 }
 0x27c   :  { %1630 = vmatprep.subr.bf16.mxu0 %v3383_v20 }
 0x27e   :  { %3044 = vmatmul.mubr.bf16.gmra.mxu0 %v3826_v56 }
 0x27f   :  { %3047 = vmatprep.mubr.bf16.mxu0 %v3828_v61  ;;  %1631 = vmatpush1.bf16.msra.mxu0 %v3381_v21 }
 0x280   :  { %1632 = vmatprep.subr.bf16.mxu0 %v3387_v23 }
 0x283   :  { %1633 = vmatpush1.bf16.msra.mxu0 %v3385_v24 }
 0x284   :  { %1634 = vmatprep.subr.bf16.mxu0 %v3391_v26 }
 0x286   :  { %3048 = vmatmul.mubr.bf16.gmra.mxu0 %v3832_v47 }
 0x287   :  { %3051 = vmatprep.mubr.bf16.mxu0 %v3834_v52  ;;  %1635 = vmatpush1.bf16.msra.mxu0 %v3389_v27 }
 0x288   :  { %1636 = vmatprep.subr.bf16.mxu0 %v3395_v29 }
 0x28b   :  { %1637 = vmatpush1.bf16.msra.mxu0 %v3393_v30 }
 0x28c   :  { %1638 = vmatprep.subr.bf16.mxu0 %v3399_v32 }
 0x28e   :  { %3052 = vmatmul.mubr.bf16.gmra.mxu0 %v3838_v13 }
 0x28f   :  { %1658 = vmatprep.mubr.bf16.mxu0 %v4066_v40  ;;  %1639 = vmatpush1.bf16.msra.mxu0 %v3397_v33 }
 0x290   :  { %1640 = vmatprep.subr.bf16.mxu0 %v3403_v35 }
 0x293   :  { %1641 = vmatpush1.bf16.msra.mxu0 %v3401_v36 }
 0x294   :  { %3151 = vmatprep.subr.bf16.mxu0 %v3842_v45 }
 0x2f7   :  { %v3073_v19 = vpop.f32.mrf.mxu1 }
 0x2f9   :  { %v1362_v22 = vpop.f32.mrf.mxu1 }
 0x2fb   :  { %v3074_v25 = vpop.f32.mrf.mxu1 }
 0x2fd   :  { %v1365_v28 = vpop.f32.mrf.mxu1 }
 0x2ff   :  { %v3077_v30 = vpop.f32.mrf.mxu1 }
 0x301   :  { %v1378_v33 = vpop.f32.mrf.mxu1 }
 0x303   :  { %v3078_v36 = vpop.f32.mrf.mxu1 }
 0x305   :  { %v1381_v13 = vpop.f32.mrf.mxu1 }
 0x307   :  { %v3877_v5 = vpop.f32.mrf.mxu1 }
 0x309   :  { %v1394_v0 = vpop.f32.mrf.mxu1 }
 0x316   :  { %v2977_v15 = vpop.f32.mrf.mxu0 }
 0x317   :  { %v1031_v61 = vadd.f32 %v3009_v38, %v2977_v15 }
 0x318   :  { %v877_v17 = vpop.f32.mrf.mxu0 }
 0x319   :  { %v1023_v47 = vadd.f32 %v1022_v41, %v877_v17  ;;  %v3082_v17 = vpop.f32.mrf.mxu1 }
 0x31a   :  { %v2978_v18 = vpop.f32.mrf.mxu0 }
 0x31b   :  { %v1034_v1 = vadd.f32 %v3010_v46, %v2978_v18  ;;  %v3407_v18 = vld [vmem:[#allocation10 + $0x68] sm:$0xff]  }
 0x31c   :  { %v880_v20 = vpop.f32.mrf.mxu0 }
 0x31d   :  { %v1026_v6 = vadd.f32 %v1025_v51, %v880_v20 }
 0x31e   :  { %v2981_v21 = vpop.f32.mrf.mxu0 }
 0x31f   :  { %v1047_v41 = vadd.f32 %v3013_v53, %v2981_v21 }
 0x320   :  { %v893_v23 = vpop.f32.mrf.mxu0 }
 0x321   :  { %v1039_v48 = vadd.f32 %v1038_v57, %v893_v23 }
 0x322   :  { %v2982_v24 = vpop.f32.mrf.mxu0 }
 0x323   :  { %v1050_v39 = vadd.f32 %v3014_v60, %v2982_v24 }
 0x324   :  { %v896_v26 = vpop.f32.mrf.mxu0 }
 0x326   :  { %v3863_v27 = vpop.f32.mrf.mxu0 }
 0x328   :  { %v909_v29 = vpop.f32.mrf.mxu0 }
 0x32a   :  { %v3865_v31 = vpop.f32.mrf.mxu0 }
 0x32c   :  { %v3867_v32 = vpop.f32.mrf.mxu0 }
 0x32e   :  { %v3869_v34 = vpop.f32.mrf.mxu0 }
 0x330   :  { %v3871_v35 = vpop.f32.mrf.mxu0 }
 0x332   :  { %v3873_v37 = vpop.f32.mrf.mxu0 }
 0x334   :  { %v3875_v40 = vpop.f32.mrf.mxu0 }
 0x336   :  { %v3041_v52 = vpop.f32.mrf.mxu0 }
 0x337   :  { %v1249_v9 = vadd.f32 %v3041_v52, %v1031_v61 }
 0x338   :  { %v1184_v56 = vpop.f32.mrf.mxu0 }
 0x339   :  { %v1247_v11 = vadd.f32 %v1184_v56, %v1023_v47  ;;  %v1427_v54 = vadd.f32 %v3073_v19, %v1249_v9  ;;  %v3406_v9 = vld [vmem:[#allocation10 + $0x70] sm:$0xff]   ;;  %v1066_v19 = vadd.f32 %v3851_v50, %v3865_v31 }
 0x33a   :  { %v3042_v7 = vpop.f32.mrf.mxu0 }
 0x33b   :  { %v1250_v4 = vadd.f32 %v3042_v7, %v1034_v1  ;;  %v1425_v63 = vadd.f32 %v1362_v22, %v1247_v11  ;;  %v1443_v47 = vmax.f32 %v1427_v54, 0.0  ;;  %v1042_v1 = vadd.f32 %v3845_v62, %v896_v26 }
 0x33c   :  { %v1187_v3 = vpop.f32.mrf.mxu0 }
 0x33d   :  { %v1428_v58 = vadd.f32 %v3074_v25, %v1250_v4  ;;  %v1248_v55 = vadd.f32 %v1187_v3, %v1026_v6  ;;  %v1441_v46 = vmax.f32 %v1425_v63, 0.0  ;;  %v1063_v63 = vadd.f32 %v3847_v2, %v3863_v27 }
 0x33e   :  { %v3045_v49 = vpop.f32.mrf.mxu0 }
 0x33f   :  { %v1426_v42 = vadd.f32 %v1365_v28, %v1248_v55  ;;  %v1444_v38 = vmax.f32 %v1428_v58, 0.0  ;;  %v1253_v52 = vadd.f32 %v3045_v49, %v1047_v41  ;;  %v1397_v55 = vpop.f32.mrf.mxu1  ;;  %v4112_v49 = vmov 0   ;;  %v3408_v28 = vld [vmem:[#allocation10 + $0x60] sm:$0xff]  }
 0x340   :  { %v1200_v15 = vpop.f32.mrf.mxu0 }
 0x341   :  { %v1442_v56 = vmax.f32 %v1426_v42, 0.0  ;;  %v1251_v61 = vadd.f32 %v1200_v15, %v1039_v48  ;;  %v3882_v4 = vpack.c.bf16 %v1444_v38, %v1443_v47  ;;  %v1431_v42 = vadd.f32 %v3077_v30, %v1253_v52  ;;  %v3085_v62 = vpop.f32.mrf.mxu1  ;;  %v3409_v15 = vld [vmem:[#allocation10 + $0x58] sm:$0xff]  }
 0x342   :  { %v3046_v7 = vpop.f32.mrf.mxu0 }
 0x343   :  { %v3880_v11 = vpack.c.bf16 %v1442_v56, %v1441_v46  ;;  %v1254_v3 = vadd.f32 %v3046_v7, %v1050_v39  ;;  %v1429_v58 = vadd.f32 %v1378_v33, %v1251_v61  ;;  %v1055_v39 = vadd.f32 %v3849_v59, %v909_v29  ;;  %v1410_v27 = vpop.f32.mrf.mxu1 }
 0x344   :  { %v1203_v6 = vpop.f32.mrf.mxu0  ;;  %v1447_v23 = vmax.f32 %v1431_v42, 0.0 }
 0x345   :  { %v1252_v51 = vadd.f32 %v1203_v6, %v1042_v1  ;;  %v1432_v53 = vadd.f32 %v3078_v36, %v1254_v3  ;;  %1659 = vmatmul.mubr.bf16.vlgmr.msra.gmra.mxu0 %v3880_v11  ;;  %3103 = vmatprep.mubr.bf16.mxu1 %v3880_v11  ;;  %v1445_v20 = vmax.f32 %v1429_v58, 0.0  ;;  %v3086_v38 = vpop.f32.mrf.mxu1  ;;  %v3410_v3 = vld [vmem:[#allocation10 + $0x50] sm:$0xff]  }
 0x346   :  { %v3049_v48 = vpop.f32.mrf.mxu0  ;;  %3104 = vmatmul.mubr.bf16.vlgmr.msra.gmra.mxu1 %v3882_v4  ;;  %1668 = vmatprep.mubr.bf16.mxu0 %v4112_v49 }
 0x347   :  { %v1430_v54 = vadd.f32 %v1381_v13, %v1252_v51  ;;  %3152 = vmatpush3.bf16.msra.mxu0 %v3842_v45  ;;  %v1448_v57 = vmax.f32 %v1432_v53, 0.0  ;;  %v1257_v24 = vadd.f32 %v3049_v48, %v1063_v63  ;;  %v1058_v13 = vadd.f32 %v3853_v8, %v3867_v32  ;;  %v1413_v1 = vpop.f32.mrf.mxu1 }
 0x348   :  { %v1216_v60 = vpop.f32.mrf.mxu0  ;;  %3153 = vmatprep.subr.bf16.mxu0 %v3406_v9  ;;  %v1071_v32 = vadd.f32 %v3857_v12, %v3871_v35  ;;  %v1074_v12 = vadd.f32 %v3861_v16, %v3875_v40  ;;  %v3411_v16 = vld [vmem:[#allocation10 + $0x48] sm:$0xff]  }
 0x349   :  { %v1446_v21 = vmax.f32 %v1430_v54, 0.0  ;;  %v1255_v22 = vadd.f32 %v1216_v60, %v1055_v39  ;;  %v3898_v25 = vpack.c.bf16 %v1448_v57, %v1447_v23  ;;  %v1435_v31 = vadd.f32 %v3877_v5, %v1257_v24  ;;  %v3412_v39 = vld [vmem:[#allocation10 + $0x40] sm:$0xff]  }
 0x34a   :  { %v3050_v59 = vpop.f32.mrf.mxu0  ;;  %v1082_v5 = vadd.f32 %v3859_v14, %v3873_v37 }
 0x34b   :  { %v3896_v45 = vpack.c.bf16 %v1446_v21, %v1445_v20  ;;  %v1258_v2 = vadd.f32 %v3050_v59, %v1066_v19  ;;  %3154 = vmatpush3.bf16.msra.mxu0 %v3406_v9  ;;  %v1433_v50 = vadd.f32 %v1394_v0, %v1255_v22  ;;  %v1079_v0 = vadd.f32 %v3855_v10, %v3869_v34 }
 0x34c   :  { %v1219_v26 = vpop.f32.mrf.mxu0  ;;  %3155 = vmatprep.subr.bf16.mxu0 %v3407_v18  ;;  %v1451_v61 = vmax.f32 %v1435_v31, 0.0 }
 0x34d   :  { %v1256_v29 = vadd.f32 %v1219_v26, %v1058_v13  ;;  %v1436_v30 = vadd.f32 %v3082_v17, %v1258_v2  ;;  %1669 = vmatmul.mubr.bf16.gmra.mxu0 %v3882_v4  ;;  %3107 = vmatprep.mubr.bf16.mxu1 %v3896_v45  ;;  %v1449_v17 = vmax.f32 %v1433_v50, 0.0 }
 0x34e   :  { %v3053_v8 = vpop.f32.mrf.mxu0  ;;  %3108 = vmatmul.mubr.bf16.gmra.mxu1 %v3898_v25  ;;  %1678 = vmatprep.mubr.bf16.mxu0 %v4112_v49 }
 0x34f   :  { %v1434_v33 = vadd.f32 %v1397_v55, %v1256_v29  ;;  %3156 = vmatpush3.bf16.msra.mxu0 %v3407_v18  ;;  %v1452_v36 = vmax.f32 %v1436_v30, 0.0  ;;  %v1261_v47 = vadd.f32 %v3053_v8, %v1079_v0 }
 0x350   :  { %v1232_v41 = vpop.f32.mrf.mxu0  ;;  %3157 = vmatprep.subr.bf16.mxu0 %v3408_v28 }
 0x351   :  { %v1450_v46 = vmax.f32 %v1434_v33, 0.0  ;;  %v1259_v56 = vadd.f32 %v1232_v41, %v1071_v32  ;;  %v1462_v10 = vpack.c.bf16 %v1452_v36, %v1451_v61  ;;  %v1439_v37 = vadd.f32 %v3085_v62, %v1261_v47 }
 0x352   :  { %v3054_v52 = vpop.f32.mrf.mxu0 }
 0x353   :  { %v1461_v35 = vpack.c.bf16 %v1450_v46, %v1449_v17  ;;  %v1262_v7 = vadd.f32 %v3054_v52, %v1082_v5  ;;  %3158 = vmatpush3.bf16.msra.mxu0 %v3408_v28  ;;  %v1437_v6 = vadd.f32 %v1410_v27, %v1259_v56  ;;  %v1455_v53 = vmax.f32 %v1439_v37, 0.0 }
 0x354   :  { %v1235_v34 = vpop.f32.mrf.mxu0  ;;  %3159 = vmatprep.subr.bf16.mxu0 %v3409_v15 }
 0x355   :  { %v1260_v55 = vadd.f32 %v1235_v34, %v1074_v12  ;;  %v1440_v14 = vadd.f32 %v3086_v38, %v1262_v7  ;;  %1679 = vmatmul.mubr.bf16.gmra.mxu0 %v3896_v45  ;;  %3111 = vmatprep.mubr.bf16.mxu1 %v1461_v35  ;;  %v1453_v58 = vmax.f32 %v1437_v6, 0.0 }
 0x356   :  { %3112 = vmatmul.mubr.bf16.gmra.mxu1 %v1462_v10  ;;  %1688 = vmatprep.mubr.bf16.mxu0 %v4112_v49 }
 0x357   :  { %v1438_v9 = vadd.f32 %v1413_v1, %v1260_v55  ;;  %3160 = vmatpush3.bf16.msra.mxu0 %v3409_v15  ;;  %v1456_v40 = vmax.f32 %v1440_v14, 0.0 }
 0x358   :  { %3161 = vmatprep.subr.bf16.mxu0 %v3410_v3 }
 0x359   :  { %v1454_v51 = vmax.f32 %v1438_v9, 0.0  ;;  %v1464_v48 = vpack.c.bf16 %v1456_v40, %v1455_v53 }
 0x35b   :  { %v1463_v42 = vpack.c.bf16 %v1454_v51, %v1453_v58  ;;  %3162 = vmatpush3.bf16.msra.mxu0 %v3410_v3 }
 0x35c   :  { %3163 = vmatprep.subr.bf16.mxu0 %v3411_v16 }
 0x35d   :  { %1689 = vmatmul.mubr.bf16.gmra.mxu0 %v3898_v25  ;;  %3115 = vmatprep.mubr.bf16.mxu1 %v1463_v42 }
 0x35e   :  { %3116 = vmatmul.mubr.bf16.gmra.mxu1 %v1464_v48  ;;  %1698 = vmatprep.mubr.bf16.mxu0 %v4112_v49 }
 0x35f   :  { %3164 = vmatpush3.bf16.msra.mxu0 %v3411_v16  ;;  %3135 = vmatprep.mubr.bf16.mxu1 %v3712_v43 }
 0x360   :  { %3165 = vmatprep.subr.bf16.mxu0 %v3412_v39 }
 0x363   :  { %3166 = vmatpush3.bf16.msra.mxu0 %v3412_v39 }
 0x365   :  { %1699 = vmatmul.mubr.bf16.gmra.mxu0 %v1461_v35 }
 0x366   :  { %1708 = vmatprep.mubr.bf16.mxu0 %v4112_v49 }
 0x36d   :  { %1709 = vmatmul.mubr.bf16.gmra.mxu0 %v1462_v10 }
 0x36e   :  { %1718 = vmatprep.mubr.bf16.mxu0 %v4112_v49 }
 0x375   :  { %1719 = vmatmul.mubr.bf16.gmra.mxu0 %v1463_v42 }
 0x376   :  { %1728 = vmatprep.mubr.bf16.mxu0 %v4112_v49 }
 0x37d   :  { %1729 = vmatmul.mubr.bf16.gmra.mxu0 %v1464_v48 }
 0x37e   :  { %3167 = vmatprep.mubr.bf16.mxu0 %v3880_v11 }
 0x385   :  { %3168 = vmatmul.mubr.bf16.vlgmr.msra.gmra.mxu0 %v3882_v4 }
 0x386   :  { %3171 = vmatprep.mubr.bf16.mxu0 %v3896_v45 }
 0x38d   :  { %3172 = vmatmul.mubr.bf16.gmra.mxu0 %v3898_v25 }
 0x38e   :  { %3175 = vmatprep.mubr.bf16.mxu0 %v1461_v35 }
 0x395   :  { %3176 = vmatmul.mubr.bf16.gmra.mxu0 %v1462_v10 }
 0x396   :  { %3179 = vmatprep.mubr.bf16.mxu0 %v1463_v42 }
 0x39d   :  { %3180 = vmatmul.mubr.bf16.gmra.mxu0 %v1464_v48 }
 0x39e   :  { %3231 = vmatprep.mubr.bf16.mxu0 %v3715_v44 }
 0x405   :  { %v1660_v43 = vpop.f32.mrf.mxu0 }
 0x406   :  { %v3926_v54 = vpop.f32.mrf.mxu1 }
 0x407   :  { %v1662_v63 = vpop.f32.mrf.mxu0 }
 0x408   :  { %v3928_v49 = vpop.f32.mrf.mxu1 }
 0x409   :  { %v1664_v57 = vpop.f32.mrf.mxu0 }
 0x40a   :  { %v3930_v11 = vpack.c.bf16 %v1664_v57, %v1660_v43  ;;  %v3106_v4 = vpop.f32.mrf.mxu1  ;;  %v4113_v43 = vld [vmem:[#allocation19_spill] sm:$0xff] }
 0x40b   :  { %v1666_v60 = vpop.f32.mrf.mxu0  ;;  %v1841_v9 = vpack.c.bf16 %v3106_v4, %v3926_v54  ;;  %v4114_v54 = vld [vmem:[#allocation20_spill] sm:$0xff]  ;;  %v4116_v4 = vld [vmem:[#allocation22_spill] sm:$0xff] }
 0x40c   :  { %v3932_v62 = vpack.c.bf16 %v1666_v60, %v1662_v63  ;;  %v1776_v18 = vpop.f32.mrf.mxu1 }
 0x40d   :  { %v1670_v19 = vpop.f32.mrf.mxu0  ;;  %v1838_v58 = vpack.c.bf16 %v1776_v18, %v3928_v49  ;;  %v4115_v49 = vld [vmem:[#allocation21_spill] sm:$0xff] }
 0x40e   :  { %v3109_v20 = vpop.f32.mrf.mxu1 }
 0x40f   :  { %v1672_v21 = vpop.f32.mrf.mxu0 }
 0x410   :  { %v1789_v22 = vpop.f32.mrf.mxu1 }
 0x411   :  { %v1674_v23 = vpop.f32.mrf.mxu0 }
 0x412   :  { %v3934_v44 = vpack.c.bf16 %v1674_v23, %v1670_v19  ;;  %v3110_v24 = vpop.f32.mrf.mxu1  ;;  %v4117_v19 = vld [vmem:[#allocation23_spill] sm:$0xff] }
 0x413   :  { %v1676_v59 = vpop.f32.mrf.mxu0  ;;  %v1847_v1 = vpack.c.bf16 %v3110_v24, %v3109_v20  ;;  %v4118_v20 = vld [vmem:[#allocation24_spill] sm:$0xff] }
 0x414   :  { %v3936_v13 = vpack.c.bf16 %v1676_v59, %v1672_v21  ;;  %v1792_v45 = vpop.f32.mrf.mxu1  ;;  %v4120_v59 = vld [vmem:[#allocation26_spill] sm:$0xff] }
 0x415   :  { %v3938_v2 = vpop.f32.mrf.mxu0  ;;  %v1844_v55 = vpack.c.bf16 %v1792_v45, %v1789_v22  ;;  %v4119_v22 = vld [vmem:[#allocation25_spill] sm:$0xff]  ;;  %v4121_v45 = vld [vmem:[#allocation27_spill] sm:$0xff] }
 0x416   :  { %v3113_v25 = vpop.f32.mrf.mxu1 }
 0x417   :  { %v1682_v26 = vpop.f32.mrf.mxu0 }
 0x418   :  { %v1805_v27 = vpop.f32.mrf.mxu1 }
 0x419   :  { %v3940_v28 = vpop.f32.mrf.mxu0 }
 0x41a   :  { %v3114_v50 = vpop.f32.mrf.mxu1  ;;  %v1842_v18 = vpack.c.bf16 %v3940_v28, %v3938_v2  ;;  %v4127_v28 = vld [vmem:[#allocation33_spill] sm:$0xff] }
 0x41b   :  { %v1686_v29 = vpop.f32.mrf.mxu0  ;;  %v1853_v47 = vpack.c.bf16 %v3114_v50, %v3113_v25  ;;  %v4122_v25 = vld [vmem:[#allocation28_spill] sm:$0xff]  ;;  %v4128_v50 = vld [vmem:[#allocation34_spill] sm:$0xff] }
 0x41c   :  { %v3942_v30 = vpack.c.bf16 %v1686_v29, %v1682_v26  ;;  %v1808_v31 = vpop.f32.mrf.mxu1  ;;  %v4125_v26 = vld [vmem:[#allocation31_spill] sm:$0xff] }
 0x41d   :  { %v3944_v8 = vpop.f32.mrf.mxu0  ;;  %v1850_v7 = vpack.c.bf16 %v1808_v31, %v1805_v27  ;;  %v4126_v27 = vld [vmem:[#allocation32_spill] sm:$0xff]  ;;  %v4129_v29 = vld [vmem:[#allocation35_spill] sm:$0xff] }
 0x41e   :  { %v3117_v32 = vpop.f32.mrf.mxu1  ;;  %v4130_v31 = vld [vmem:[#allocation36_spill] sm:$0xff] }
 0x41f   :  { %v1692_v33 = vpop.f32.mrf.mxu0 }
 0x420   :  { %v1821_v0 = vpop.f32.mrf.mxu1 }
 0x421   :  { %v1694_v36 = vpop.f32.mrf.mxu0 }
 0x422   :  { %v3118_v41 = vpop.f32.mrf.mxu1  ;;  %v1845_v60 = vpack.c.bf16 %v1694_v36, %v3944_v8  ;;  %v4131_v8 = vld [vmem:[#allocation37_spill] sm:$0xff]  ;;  %v3416_v36 = vld [vmem:[#allocation11 + $0x20] sm:$0xff]  }
 0x423   :  { %v1859_v38 = vpack.c.bf16 %v3118_v41, %v3117_v32  ;;  %v1696_v15 = vpop.f32.mrf.mxu0  ;;  %v4133_v32 = vld [vmem:[#allocation39_spill] sm:$0xff]  ;;  %v3417_v41 = vld [vmem:[#allocation11 + $0x18] sm:$0xff]  }
 0x424   :  { %v3946_v5 = vpack.c.bf16 %v1696_v15, %v1692_v33  ;;  %v1824_v17 = vpop.f32.mrf.mxu1  ;;  %v4134_v33 = vld [vmem:[#allocation40_spill] sm:$0xff] }
 0x425   :  { %v1856_v46 = vpack.c.bf16 %v1824_v17, %v1821_v0  ;;  %v1700_v56 = vpop.f32.mrf.mxu0  ;;  %3215 = vmatprep.subr.bf16.mxu0 %v1859_v38  ;;  %v3414_v0 = vld [vmem:[#allocation11 + $0x30] sm:$0xff]   ;;  %v3419_v15 = vld [vmem:[#allocation11 + $0x8] sm:$0xff]  }
 0x426   :  { %3216 = vmatpush3.bf16.msra.mxu0 %v1859_v38  ;;  %v3418_v38 = vld [vmem:[#allocation11 + $0x10] sm:$0xff]  }
 0x427   :  { %v1702_v61 = vpop.f32.mrf.mxu0  ;;  %3217 = vmatprep.subr.bf16.mxu0 %v1856_v46 }
 0x429   :  { %v1704_v52 = vpop.f32.mrf.mxu0 }
 0x42a   :  { %3218 = vmatpush3.bf16.msra.mxu0 %v1856_v46  ;;  %v1848_v57 = vpack.c.bf16 %v1704_v52, %v1700_v56 }
 0x42b   :  { %v1706_v12 = vpop.f32.mrf.mxu0  ;;  %3219 = vmatprep.subr.bf16.mxu0 %v1853_v47 }
 0x42c   :  { %v3948_v35 = vpack.c.bf16 %v1706_v12, %v1702_v61 }
 0x42d   :  { %v1710_v10 = vpop.f32.mrf.mxu0 }
 0x42e   :  { %3220 = vmatpush3.bf16.msra.mxu0 %v1853_v47 }
 0x42f   :  { %v1712_v34 = vpop.f32.mrf.mxu0  ;;  %3221 = vmatprep.subr.bf16.mxu0 %v1850_v7 }
 0x431   :  { %v1714_v3 = vpop.f32.mrf.mxu0 }
 0x432   :  { %3222 = vmatpush3.bf16.msra.mxu0 %v1850_v7  ;;  %v1851_v63 = vpack.c.bf16 %v1714_v3, %v1710_v10 }
 0x433   :  { %v1716_v6 = vpop.f32.mrf.mxu0  ;;  %3223 = vmatprep.subr.bf16.mxu0 %v1847_v1 }
 0x434   :  { %v1852_v2 = vpack.c.bf16 %v1716_v6, %v1712_v34 }
 0x435   :  { %v1720_v14 = vpop.f32.mrf.mxu0 }
 0x436   :  { %3224 = vmatpush3.bf16.msra.mxu0 %v1847_v1 }
 0x437   :  { %v1722_v37 = vpop.f32.mrf.mxu0  ;;  %3225 = vmatprep.subr.bf16.mxu0 %v1844_v55 }
 0x439   :  { %v1724_v40 = vpop.f32.mrf.mxu0 }
 0x43a   :  { %3226 = vmatpush3.bf16.msra.mxu0 %v1844_v55  ;;  %v1854_v39 = vpack.c.bf16 %v1724_v40, %v1720_v14 }
 0x43b   :  { %v1726_v16 = vpop.f32.mrf.mxu0  ;;  %3227 = vmatprep.subr.bf16.mxu0 %v1841_v9 }
 0x43c   :  { %v1855_v24 = vpack.c.bf16 %v1726_v16, %v1722_v37 }
 0x43d   :  { %v1730_v51 = vpop.f32.mrf.mxu0 }
 0x43e   :  { %3228 = vmatpush3.bf16.msra.mxu0 %v1841_v9 }
 0x43f   :  { %v1732_v53 = vpop.f32.mrf.mxu0  ;;  %3229 = vmatprep.subr.bf16.mxu0 %v1838_v58 }
 0x441   :  { %v1734_v42 = vpop.f32.mrf.mxu0 }
 0x442   :  { %v1857_v48 = vpack.c.bf16 %v1734_v42, %v1730_v51  ;;  %3230 = vmatpush3.bf16.msra.mxu0 %v1838_v58 }
 0x443   :  { %v1736_v21 = vpop.f32.mrf.mxu0 }
 0x444   :  { %3119 = vmatprep.subr.bf16.mxu1 %v1857_v48  ;;  %v1858_v23 = vpack.c.bf16 %v1736_v21, %v1732_v53 }
 0x445   :  { %3120 = vmatpush3.bf16.msra.mxu1 %v1857_v48  ;;  %3232 = vmatmul.mubr.bf16.vlgmr.msra.gmra.mxu0 %v4113_v43  ;;  %v3169_v17 = vpop.f32.mrf.mxu0 }
 0x446   :  { %3121 = vmatprep.subr.bf16.mxu1 %v1854_v39  ;;  %3235 = vmatprep.mubr.bf16.mxu0 %v4114_v54 }
 0x447   :  { %v2056_v46 = vpop.f32.mrf.mxu0 }
 0x449   :  { %3122 = vmatpush3.bf16.msra.mxu1 %v1854_v39  ;;  %v3170_v56 = vpop.f32.mrf.mxu0 }
 0x44a   :  { %3123 = vmatprep.subr.bf16.mxu1 %v1851_v63 }
 0x44b   :  { %v2059_v61 = vpop.f32.mrf.mxu0 }
 0x44d   :  { %3124 = vmatpush3.bf16.msra.mxu1 %v1851_v63  ;;  %3236 = vmatmul.mubr.bf16.gmra.mxu0 %v4115_v49  ;;  %v3173_v47 = vpop.f32.mrf.mxu0 }
 0x44e   :  { %3125 = vmatprep.subr.bf16.mxu1 %v1848_v57  ;;  %3239 = vmatprep.mubr.bf16.mxu0 %v4116_v4 }
 0x44f   :  { %v2072_v52 = vpop.f32.mrf.mxu0 }
 0x451   :  { %3126 = vmatpush3.bf16.msra.mxu1 %v1848_v57  ;;  %v3174_v12 = vpop.f32.mrf.mxu0 }
 0x452   :  { %3127 = vmatprep.subr.bf16.mxu1 %v1845_v60 }
 0x455   :  { %3128 = vmatpush3.bf16.msra.mxu1 %v1845_v60  ;;  %3240 = vmatmul.mubr.bf16.gmra.mxu0 %v4117_v19 }
 0x456   :  { %3129 = vmatprep.subr.bf16.mxu1 %v1842_v18  ;;  %3243 = vmatprep.mubr.bf16.mxu0 %v4118_v20 }
 0x459   :  { %3130 = vmatpush3.bf16.msra.mxu1 %v1842_v18 }
 0x45a   :  { %3131 = vmatprep.subr.bf16.mxu1 %v3934_v44 }
 0x45d   :  { %3132 = vmatpush3.bf16.msra.mxu1 %v3934_v44  ;;  %3244 = vmatmul.mubr.bf16.gmra.mxu0 %v4119_v22  ;;  %v4123_v44 = vld [vmem:[#allocation29_spill] sm:$0xff] }
 0x45e   :  { %3133 = vmatprep.subr.bf16.mxu1 %v3930_v11 }
 0x461   :  { %3134 = vmatpush3.bf16.msra.mxu1 %v3930_v11  ;;  %v4124_v11 = vld [vmem:[#allocation30_spill] sm:$0xff] }
 0x462   :  { %3183 = vmatprep.subr.bf16.mxu1 %v1858_v23 }
 0x464   :  { %3136 = vmatmul.mubr.bf16.vlgmr.msra.gmra.mxu1 %v4120_v59 }
 0x465   :  { %3184 = vmatpush3.bf16.msra.mxu1 %v1858_v23  ;;  %3139 = vmatprep.mubr.bf16.mxu1 %v4121_v45 }
 0x466   :  { %3185 = vmatprep.subr.bf16.mxu1 %v1855_v24 }
 0x469   :  { %3186 = vmatpush3.bf16.msra.mxu1 %v1855_v24 }
 0x46a   :  { %3187 = vmatprep.subr.bf16.mxu1 %v1852_v2 }
 0x46c   :  { %3140 = vmatmul.mubr.bf16.gmra.mxu1 %v4122_v25 }
 0x46d   :  { %3188 = vmatpush3.bf16.msra.mxu1 %v1852_v2  ;;  %3143 = vmatprep.mubr.bf16.mxu1 %v4123_v44 }
 0x46e   :  { %3189 = vmatprep.subr.bf16.mxu1 %v3948_v35 }
 0x471   :  { %3190 = vmatpush3.bf16.msra.mxu1 %v3948_v35  ;;  %v3991_v35 = vpop.f32.mrf.mxu0 }
 0x472   :  { %3191 = vmatprep.subr.bf16.mxu1 %v3946_v5 }
 0x473   :  { %v3993_v7 = vpop.f32.mrf.mxu0 }
 0x474   :  { %3144 = vmatmul.mubr.bf16.gmra.mxu1 %v4124_v11 }
 0x475   :  { %3192 = vmatpush3.bf16.msra.mxu1 %v3946_v5  ;;  %3147 = vmatprep.mubr.bf16.mxu1 %v4125_v26  ;;  %v3420_v5 = vld [vmem:[#allocation11] sm:$0xff]   ;;  %v3995_v10 = vpop.f32.mrf.mxu0 }
 0x476   :  { %3193 = vmatprep.subr.bf16.mxu1 %v3942_v30 }
 0x477   :  { %v3997_v34 = vpop.f32.mrf.mxu0 }
 0x479   :  { %3194 = vmatpush3.bf16.msra.mxu1 %v3942_v30  ;;  %v4132_v30 = vld [vmem:[#allocation38_spill] sm:$0xff]  ;;  %v3999_v1 = vpop.f32.mrf.mxu0 }
 0x47a   :  { %3195 = vmatprep.subr.bf16.mxu1 %v3936_v13 }
 0x47b   :  { %v4001_v3 = vpop.f32.mrf.mxu0 }
 0x47c   :  { %3148 = vmatmul.mubr.bf16.gmra.mxu1 %v4126_v27 }
 0x47d   :  { %3196 = vmatpush3.bf16.msra.mxu1 %v3936_v13  ;;  %3199 = vmatprep.mubr.bf16.mxu1 %v4127_v28  ;;  %v3413_v13 = vld [vmem:[#allocation11 + $0x38] sm:$0xff]   ;;  %v4003_v6 = vpop.f32.mrf.mxu0 }
 0x47e   :  { %3197 = vmatprep.subr.bf16.mxu1 %v3932_v62 }
 0x47f   :  { %v4005_v55 = vpop.f32.mrf.mxu0 }
 0x481   :  { %3198 = vmatpush3.bf16.msra.mxu1 %v3932_v62  ;;  %v3415_v62 = vld [vmem:[#allocation11 + $0x28] sm:$0xff]   ;;  %v4007_v37 = vpop.f32.mrf.mxu0 }
 0x482   :  { %3247 = vmatprep.subr.bf16.mxu1 %v3413_v13 }
 0x484   :  { %3200 = vmatmul.mubr.bf16.vlgmr.msra.gmra.mxu1 %v4128_v50 }
 0x485   :  { %3203 = vmatprep.mubr.bf16.mxu1 %v4129_v29  ;;  %3248 = vmatpush3.bf16.msra.mxu1 %v3413_v13 }
 0x486   :  { %3249 = vmatprep.subr.bf16.mxu1 %v3414_v0 }
 0x489   :  { %3250 = vmatpush3.bf16.msra.mxu1 %v3414_v0 }
 0x48a   :  { %3251 = vmatprep.subr.bf16.mxu1 %v3415_v62 }
 0x48c   :  { %3204 = vmatmul.mubr.bf16.gmra.mxu1 %v4130_v31 }
 0x48d   :  { %3207 = vmatprep.mubr.bf16.mxu1 %v4131_v8  ;;  %3252 = vmatpush3.bf16.msra.mxu1 %v3415_v62 }
 0x48e   :  { %3253 = vmatprep.subr.bf16.mxu1 %v3416_v36 }
 0x491   :  { %3254 = vmatpush3.bf16.msra.mxu1 %v3416_v36 }
 0x492   :  { %3255 = vmatprep.subr.bf16.mxu1 %v3417_v41 }
 0x494   :  { %3208 = vmatmul.mubr.bf16.gmra.mxu1 %v4132_v30 }
 0x495   :  { %3211 = vmatprep.mubr.bf16.mxu1 %v4133_v32  ;;  %3256 = vmatpush3.bf16.msra.mxu1 %v3417_v41 }
 0x496   :  { %3257 = vmatprep.subr.bf16.mxu1 %v3418_v38 }
 0x499   :  { %3258 = vmatpush3.bf16.msra.mxu1 %v3418_v38 }
 0x49a   :  { %3259 = vmatprep.subr.bf16.mxu1 %v3419_v15 }
 0x49c   :  { %3212 = vmatmul.mubr.bf16.gmra.mxu1 %v4134_v33 }
 0x49d   :  { %3260 = vmatpush3.bf16.msra.mxu1 %v3419_v15 }
 0x49e   :  { %3261 = vmatprep.subr.bf16.mxu1 %v3420_v5 }
 0x4a1   :  { %3262 = vmatpush3.bf16.msra.mxu1 %v3420_v5 }
 0x505   :  { %v3233_v16 = vpop.f32.mrf.mxu0 }
 0x507   :  { %v2266_v53 = vpop.f32.mrf.mxu0 }
 0x509   :  { %v3234_v39 = vpop.f32.mrf.mxu0 }
 0x50b   :  { %v2269_v63 = vpop.f32.mrf.mxu0 }
 0x50d   :  { %v3237_v4 = vpop.f32.mrf.mxu0 }
 0x50f   :  { %v2282_v19 = vpop.f32.mrf.mxu0 }
 0x511   :  { %v3238_v22 = vpop.f32.mrf.mxu0 }
 0x513   :  { %v2285_v59 = vpop.f32.mrf.mxu0 }
 0x515   :  { %v3241_v28 = vpop.f32.mrf.mxu0 }
 0x517   :  { %v2298_v0 = vpop.f32.mrf.mxu0 }
 0x524   :  { %v3137_v14 = vpop.f32.mrf.mxu1 }
 0x525   :  { %v2065_v2 = vadd.f32 %v3169_v17, %v3137_v14 }
 0x526   :  { %v1911_v9 = vpop.f32.mrf.mxu1 }
 0x527   :  { %v2057_v45 = vadd.f32 %v2056_v46, %v1911_v9 }
 0x528   :  { %v3138_v40 = vpop.f32.mrf.mxu1 }
 0x529   :  { %v2068_v44 = vadd.f32 %v3170_v56, %v3138_v40  ;;  %v3242_v40 = vpop.f32.mrf.mxu0 }
 0x52a   :  { %v1914_v58 = vpop.f32.mrf.mxu1 }
 0x52b   :  { %v2060_v50 = vadd.f32 %v2059_v61, %v1914_v58 }
 0x52c   :  { %v3141_v51 = vpop.f32.mrf.mxu1 }
 0x52d   :  { %v2081_v41 = vadd.f32 %v3173_v47, %v3141_v51 }
 0x52e   :  { %v1927_v42 = vpop.f32.mrf.mxu1 }
 0x52f   :  { %v2073_v62 = vadd.f32 %v2072_v52, %v1927_v42 }
 0x530   :  { %v3142_v48 = vpop.f32.mrf.mxu1 }
 0x531   :  { %v2084_v5 = vadd.f32 %v3174_v12, %v3142_v48  ;;  %v2301_v12 = vpop.f32.mrf.mxu0 }
 0x532   :  { %v1930_v43 = vpop.f32.mrf.mxu1 }
 0x533   :  { %v2076_v58 = vadd.f32 %v3991_v35, %v1930_v43 }
 0x534   :  { %v3145_v54 = vpop.f32.mrf.mxu1 }
 0x536   :  { %v1943_v57 = vpop.f32.mrf.mxu1 }
 0x537   :  { %v2089_v48 = vadd.f32 %v3995_v10, %v1943_v57 }
 0x538   :  { %v3146_v49 = vpop.f32.mrf.mxu1 }
 0x539   :  { %v2100_v35 = vadd.f32 %v3997_v34, %v3146_v49 }
 0x53a   :  { %v4009_v60 = vpop.f32.mrf.mxu1 }
 0x53c   :  { %v4011_v18 = vpop.f32.mrf.mxu1 }
 0x53e   :  { %v4013_v20 = vpop.f32.mrf.mxu1 }
 0x540   :  { %v4015_v21 = vpop.f32.mrf.mxu1 }
 0x542   :  { %v4017_v23 = vpop.f32.mrf.mxu1 }
 0x544   :  { %v3201_v24 = vpop.f32.mrf.mxu1 }
 0x545   :  { %v2218_v26 = vadd.f32 %v3201_v24, %v2065_v2  ;;  %v2097_v2 = vadd.f32 %v3993_v7, %v3145_v54 }
 0x546   :  { %v2153_v25 = vpop.f32.mrf.mxu1 }
 0x547   :  { %v2216_v11 = vadd.f32 %v2153_v25, %v2057_v45  ;;  %v2331_v33 = vadd.f32 %v3233_v16, %v2218_v26 }
 0x548   :  { %v3202_v27 = vpop.f32.mrf.mxu1 }
 0x549   :  { %v2219_v29 = vadd.f32 %v3202_v27, %v2068_v44  ;;  %v2329_v8 = vadd.f32 %v2266_v53, %v2216_v11  ;;  %v2347_v14 = vmax.f32 %v2331_v33, 0.0  ;;  %v2113_v33 = vadd.f32 %v4001_v3, %v4011_v18 }
 0x54a   :  { %v2156_v31 = vpop.f32.mrf.mxu1 }
 0x54b   :  { %v2332_v30 = vadd.f32 %v3234_v39, %v2219_v29  ;;  %v2217_v32 = vadd.f32 %v2156_v31, %v2060_v50  ;;  %v2345_v17 = vmax.f32 %v2329_v8, 0.0  ;;  %v3245_v50 = vpop.f32.mrf.mxu0 }
 0x54c   :  { %v3205_v13 = vpop.f32.mrf.mxu1 }
 0x54d   :  { %v2330_v36 = vadd.f32 %v2269_v63, %v2217_v32  ;;  %v2348_v38 = vmax.f32 %v2332_v30, 0.0  ;;  %v2222_v9 = vadd.f32 %v3205_v13, %v2081_v41  ;;  %v2314_v34 = vpop.f32.mrf.mxu0  ;;  %v2105_v30 = vadd.f32 %v4003_v6, %v4013_v20 }
 0x54e   :  { %v2169_v15 = vpop.f32.mrf.mxu1  ;;  %v2116_v13 = vadd.f32 %v4005_v55, %v4015_v21 }
 0x54f   :  { %v2346_v46 = vmax.f32 %v2330_v36, 0.0  ;;  %v2220_v56 = vadd.f32 %v2169_v15, %v2073_v62  ;;  %v2362_v16 = vpack.c.bf16 %v2348_v38, %v2347_v14  ;;  %v2335_v47 = vadd.f32 %v3237_v4, %v2222_v9  ;;  %v3246_v38 = vpop.f32.mrf.mxu0 }
 0x550   :  { %v3206_v61 = vpop.f32.mrf.mxu1  ;;  %v2092_v4 = vadd.f32 %v3999_v1, %v4009_v60 }
 0x551   :  { %v2223_v53 = vadd.f32 %v3206_v61, %v2084_v5  ;;  %v2361_v39 = vpack.c.bf16 %v2346_v46, %v2345_v17  ;;  %v2333_v45 = vadd.f32 %v2282_v19, %v2220_v56  ;;  %v2351_v19 = vmax.f32 %v2335_v47, 0.0  ;;  %v2317_v55 = vpop.f32.mrf.mxu0 }
 0x552   :  { %v2172_v24 = vpop.f32.mrf.mxu1  ;;  %v2108_v5 = vadd.f32 %v4007_v37, %v4017_v23  ;;  %v4036_v37 = vld [vmem:[%s4064_s7] ss:$0 sm:$0xff]  ;;  %s3582_s7 = smov [#allocation13]  }
 0x553   :  { %v2336_v52 = vadd.f32 %v3238_v22, %v2223_v53  ;;  %v2221_v42 = vadd.f32 %v2172_v24, %v2076_v58  ;;  %3263 = vmatprep.mubr.bf16.mxu1 %v2361_v39  ;;  %v2349_v43 = vmax.f32 %v2333_v45, 0.0  ;;  %s2574_s11 = sshll.u32 %s3582_s7, 4  ;;  %s2575_s11 = int_to_ptr.vmem [resolvable:$true] %s2574_s11 }
 0x554   :  { %v3209_v51 = vpop.f32.mrf.mxu1  ;;  %3264 = vmatmul.mubr.bf16.vlgmr.msra.gmra.mxu1 %v2362_v16  ;;  %s3541_s15 = scalar_lea.vmem %s2575_s11, 2048  ;;  %p3546_p3 = scmp.lt.s32.totalorder %s2575_s11, %s2575_s11 }
 0x555   :  { %v2334_v63 = vadd.f32 %v2285_v59, %v2221_v42  ;;  %v2352_v25 = vmax.f32 %v2336_v52, 0.0  ;;  %v2226_v22 = vadd.f32 %v3209_v51, %v2097_v2  ;;  %p3542_p2 = scmp.ne.s32.totalorder %s2575_s11, %s3541_s15  ;;  %p3547_p4 = scmp.lt.s32.totalorder %s3541_s15, %s3541_s15 }
 0x556   :  { %v2185_v44 = vpop.f32.mrf.mxu1 }
 0x557   :  { %v2350_v11 = vmax.f32 %v2334_v63, 0.0  ;;  %v2224_v26 = vadd.f32 %v2185_v44, %v2089_v48  ;;  %v2364_v10 = vpack.c.bf16 %v2352_v25, %v2351_v19  ;;  %v2339_v8 = vadd.f32 %v3241_v28, %v2226_v22  ;;  %p3548_p5 = por %p3547_p4, %p3546_p3 }
 0x558   :  { %v3210_v27 = vpop.f32.mrf.mxu1 }
 0x559   :  { %v2227_v29 = vadd.f32 %v3210_v27, %v2100_v35  ;;  %v2363_v31 = vpack.c.bf16 %v2350_v11, %v2349_v43  ;;  %v2337_v59 = vadd.f32 %v2298_v0, %v2224_v26  ;;  %v2355_v41 = vmax.f32 %v2339_v8, 0.0  ;;  %p3549_p6 = pnand %p3548_p5, %p3542_p2 }
 0x55a   :  { %v2188_v57 = vpop.f32.mrf.mxu1 }
 0x55b   :  { %v2340_v7 = vadd.f32 %v3242_v40, %v2227_v29  ;;  %v2225_v54 = vadd.f32 %v2188_v57, %v2092_v4  ;;  %3267 = vmatprep.mubr.bf16.mxu1 %v2363_v31  ;;  %v2353_v0 = vmax.f32 %v2337_v59, 0.0 }
 0x55c   :  { %v3213_v49 = vpop.f32.mrf.mxu1  ;;  %3268 = vmatmul.mubr.bf16.gmra.mxu1 %v2364_v10 }
 0x55d   :  { %v2338_v32 = vadd.f32 %v2301_v12, %v2225_v54  ;;  %v2356_v1 = vmax.f32 %v2340_v7, 0.0  ;;  %v2230_v28 = vadd.f32 %v3213_v49, %v2113_v33 }
 0x55e   :  { %v2201_v60 = vpop.f32.mrf.mxu1 }
 0x55f   :  { %v2354_v62 = vmax.f32 %v2338_v32, 0.0  ;;  %v2228_v36 = vadd.f32 %v2201_v60, %v2105_v30  ;;  %v2366_v17 = vpack.c.bf16 %v2356_v1, %v2355_v41  ;;  %v2343_v14 = vadd.f32 %v3245_v50, %v2230_v28 }
 0x560   :  { %v3214_v15 = vpop.f32.mrf.mxu1 }
 0x561   :  { %v2231_v6 = vadd.f32 %v3214_v15, %v2116_v13  ;;  %v2365_v20 = vpack.c.bf16 %v2354_v62, %v2353_v0  ;;  %v2341_v3 = vadd.f32 %v2314_v34, %v2228_v36  ;;  %v2359_v58 = vmax.f32 %v2343_v14, 0.0 }
 0x562   :  { %v2204_v46 = vpop.f32.mrf.mxu1 }
 0x563   :  { %v2344_v18 = vadd.f32 %v3246_v38, %v2231_v6  ;;  %v2229_v56 = vadd.f32 %v2204_v46, %v2108_v5  ;;  %3271 = vmatprep.mubr.bf16.mxu1 %v2365_v20  ;;  %v2357_v61 = vmax.f32 %v2341_v3, 0.0 }
 0x564   :  { %3272 = vmatmul.mubr.bf16.gmra.mxu1 %v2366_v17 }
 0x565   :  { %v2342_v21 = vadd.f32 %v2317_v55, %v2229_v56  ;;  %v2360_v9 = vmax.f32 %v2344_v18, 0.0 }
 0x567   :  { %v2358_v40 = vmax.f32 %v2342_v21, 0.0  ;;  %v2368_v39 = vpack.c.bf16 %v2360_v9, %v2359_v58 }
 0x569   :  { %v2367_v53 = vpack.c.bf16 %v2358_v40, %v2357_v61 }
 0x56b   :  { %3275 = vmatprep.mubr.bf16.mxu1 %v2367_v53 }
 0x56c   :  { %3276 = vmatmul.mubr.bf16.gmra.mxu1 %v2368_v39 }
 0x614   :  { %v3265_v23 = vpop.f32.mrf.mxu1 }
 0x615   :  { %v2483_v16 = vadd.f32 %v3265_v23, %v4036_v37 }
 0x616   :  { %v2474_v24 = vpop.f32.mrf.mxu1 }
 0x617   :  { %v2539_v45 = vmax.f32 %v2483_v16, 0.0  ;;  %v2475_v52 = vadd.f32 %v4036_v37, %v2474_v24 }
 0x618   :  { %v3266_v42 = vpop.f32.mrf.mxu1 }
 0x619   :  { %2555 = vst [vmem:[#allocation13 + $0x10] sm:$0xff] %v2539_v45  ;;  %v2537_v47 = vmax.f32 %v2475_v52, 0.0  ;;  %v2486_v51 = vadd.f32 %v3266_v42, %v4036_v37 }
 0x61a   :  { %v2477_v12 = vpop.f32.mrf.mxu1 }
 0x61b   :  { %2553 = vst [vmem:[#allocation13] sm:$0xff] %v2537_v47  ;;  %v2540_v48 = vmax.f32 %v2486_v51, 0.0  ;;  %v2478_v63 = vadd.f32 %v4036_v37, %v2477_v12 }
 0x61c   :  { %v3269_v2 = vpop.f32.mrf.mxu1 }
 0x61d   :  { %2556 = vst [vmem:[#allocation13 + $0x18] sm:$0xff] %v2540_v48  ;;  %v2538_v25 = vmax.f32 %v2478_v63, 0.0  ;;  %v2499_v44 = vadd.f32 %v3269_v2, %v4036_v37 }
 0x61e   :  { %v2490_v35 = vpop.f32.mrf.mxu1 }
 0x61f   :  { %2554 = vst [vmem:[#allocation13 + $0x8] sm:$0xff] %v2538_v25  ;;  %v2543_v43 = vmax.f32 %v2499_v44, 0.0  ;;  %v2491_v11 = vadd.f32 %v4036_v37, %v2490_v35 }
 0x620   :  { %v3270_v26 = vpop.f32.mrf.mxu1 }
 0x621   :  { %2559 = vst [vmem:[#allocation13 + $0x30] sm:$0xff] %v2543_v43  ;;  %v2541_v19 = vmax.f32 %v2491_v11, 0.0  ;;  %v2502_v22 = vadd.f32 %v3270_v26, %v4036_v37 }
 0x622   :  { %v2493_v27 = vpop.f32.mrf.mxu1 }
 0x623   :  { %2557 = vst [vmem:[#allocation13 + $0x20] sm:$0xff] %v2541_v19  ;;  %v2544_v50 = vmax.f32 %v2502_v22, 0.0  ;;  %v2494_v4 = vadd.f32 %v4036_v37, %v2493_v27 }
 0x624   :  { %v3273_v29 = vpop.f32.mrf.mxu1 }
 0x625   :  { %2560 = vst [vmem:[#allocation13 + $0x38] sm:$0xff] %v2544_v50  ;;  %v2542_v31 = vmax.f32 %v2494_v4, 0.0  ;;  %v2515_v10 = vadd.f32 %v3273_v29, %v4036_v37 }
 0x626   :  { %v2506_v57 = vpop.f32.mrf.mxu1 }
 0x627   :  { %2558 = vst [vmem:[#allocation13 + $0x28] sm:$0xff] %v2542_v31  ;;  %v2547_v59 = vmax.f32 %v2515_v10, 0.0  ;;  %v2507_v7 = vadd.f32 %v4036_v37, %v2506_v57 }
 0x628   :  { %v3274_v54 = vpop.f32.mrf.mxu1 }
 0x629   :  { %2563 = vst [vmem:[#allocation13 + $0x50] sm:$0xff] %v2547_v59  ;;  %v2545_v8 = vmax.f32 %v2507_v7, 0.0  ;;  %v2518_v34 = vadd.f32 %v3274_v54, %v4036_v37 }
 0x62a   :  { %v2509_v49 = vpop.f32.mrf.mxu1 }
 0x62b   :  { %2561 = vst [vmem:[#allocation13 + $0x40] sm:$0xff] %v2545_v8  ;;  %v2548_v30 = vmax.f32 %v2518_v34, 0.0  ;;  %v2510_v32 = vadd.f32 %v4036_v37, %v2509_v49 }
 0x62c   :  { %v3277_v33 = vpop.f32.mrf.mxu1 }
 0x62d   :  { %2564 = vst [vmem:[#allocation13 + $0x58] sm:$0xff] %v2548_v30  ;;  %v2546_v1 = vmax.f32 %v2510_v32, 0.0  ;;  %v2531_v60 = vadd.f32 %v3277_v33, %v4036_v37 }
 0x62e   :  { %v2522_v13 = vpop.f32.mrf.mxu1 }
 0x62f   :  { %2562 = vst [vmem:[#allocation13 + $0x48] sm:$0xff] %v2546_v1  ;;  %v2551_v0 = vmax.f32 %v2531_v60, 0.0  ;;  %v2523_v62 = vadd.f32 %v4036_v37, %v2522_v13 }
 0x630   :  { %v3278_v36 = vpop.f32.mrf.mxu1 }
 0x631   :  { %2567 = vst [vmem:[#allocation13 + $0x70] sm:$0xff] %v2551_v0  ;;  %v2549_v41 = vmax.f32 %v2523_v62, 0.0  ;;  %v2534_v28 = vadd.f32 %v3278_v36, %v4036_v37 }
 0x632   :  { %v2525_v38 = vpop.f32.mrf.mxu1 }
 0x633   :  { %2565 = vst [vmem:[#allocation13 + $0x60] sm:$0xff] %v2549_v41  ;;  %v2552_v15 = vmax.f32 %v2534_v28, 0.0  ;;  %v2526_v5 = vadd.f32 %v4036_v37, %v2525_v38 }
 0x635   :  { %2568 = vst [vmem:[#allocation13 + $0x78] sm:$0xff] %v2552_v15  ;;  %v2550_v6 = vmax.f32 %v2526_v5, 0.0 }
 0x637   :  { %2566 = vst [vmem:[#allocation13 + $0x68] sm:$0xff] %v2550_v6 }
 0x638   :  { %3552 = shalt.err (!%p3549_p6)
}
 0x639   :  { %s3583_s16 = smov 128   ;;  %s3584_s17 = smov 8  }
 0x63a   :  { %2580 = dma.vmem_to_hbm [thread:$0]  %s2575_s11, 2048, %s4065_s8, [#allocation4], %s3583_s16, %s3583_s16, %s3584_s17  }
 0x63b   :  { %3569 = dma.done.wait [#allocation4], 2048  }
 0x63c   :  { %3570 = vsyncadd [#allocation4], 4294965248 }
 0x63d   :  { %2584 = vsyncpa [#allocation3], 1 }
 0x63e   :  { %2585 = vsyncpa [#allocation6], 1 }
 0x63f   :  { %2586 = vsyncpa [#allocation9], 1 }
 0x640   :  { %2587 = vsyncpa [#allocation12], 1 }
 0x641   :  { %2588 = vsyncpa [#allocation4], 1 }

</bundles_post_ra>
